<compile_context>
chip_gen: v5e
topology: v5e:2x2
jax: 0.10.0
libtpu: 0.0.40
codegen_flags: <defaults>
</compile_context>

<pallas_src>
import math

import jax
import jax.numpy as jnp
from jax.experimental import pallas as pl
from jax.experimental.pallas import tpu as pltpu


def _make_kernel(seq_len: int, batch: int, num_steps: int, alpha: float,
                 hidden_size: int, hp: int):
    a = float(alpha)
    oma = 1.0 - a
    H = hidden_size
    HP = hp  # padded half-width (multiple of 128 lanes)

    def kernel(x_ref, win_ref, wrec_ref, wfc_ref, bin_ref, bfc_ref, s0_ref,
               out_ref, rnn_ref, ip_ref):
        # Weights are VMEM-resident for the whole (single-step) call.
        w_rec = wrec_ref[...]   # [2HP, 2HP] block-diag [[whh^T, 0], [0, wcc^T]]

        # --- Hoisted input projections for the WHOLE sequence: one slab MXU
        # matmul + one bias broadcast, staged in a VMEM scratch so per-timestep
        # rows are plain (cheap) ref loads.
        ip_ref[...] = (jnp.dot(x_ref[...], win_ref[...],
                               preferred_element_type=jnp.float32)
                       + bin_ref[...])

        s = s0_ref[...]         # [B, 2HP] fused state = [hidden | context]

        # seq_len / num_steps are small static ints -> fully unrolled straight-line
        # code with static slices.
        # TODO(synk): for long sequences switch to lax.fori_loop(..., unroll=4..8)
        # with pl.ds(pl.multiple_of(t*batch, batch), batch) and/or a T-chunked
        # "arbitrary" grid axis carrying s in VMEM scratch (v7x has 64 MiB VMEM).
        for t in range(seq_len):
            row = t * batch
            ip_t = ip_ref[row:row + batch, :]                    # [B, 2HP]
            for _ in range(num_steps):
                # One fused recurrent MXU matmul per inner step:
                #   m[:, :HP] = h @ whh^T ,  m[:, HP:] = c @ wcc^T
                m = ip_t + jnp.dot(s, w_rec, preferred_element_type=jnp.float32)
                # h_new = relu(input2h(x) + context + h2h(h))
                # c_new = relu(context2context(c) + input2context(x))
                # All slices/concat are at 128-lane (vreg) boundaries -> free.
                new_h = jnp.maximum(m[:, :HP] + s[:, HP:], 0.0)
                new_c = jnp.maximum(m[:, HP:], 0.0)
                s = s * oma + jnp.concatenate([new_h, new_c], axis=-1) * a
            rnn_ref[row:row + batch, :] = s[:, :H]               # VMEM store

        # fc readout: one MXU matmul over all T*B rows + one slab store.
        out_ref[...] = (jnp.dot(rnn_ref[...], wfc_ref[...],
                                preferred_element_type=jnp.float32)
                        + bfc_ref[...])

    return kernel


def context_rnn_forward(x, params, hidden=None, num_steps=1, alpha=1.0):
    """Pallas forward of ContextRNNNet.

    Returns (out [T,B,O], rnn_output [T,B,H]) like the PyTorch module.
    """
    assert num_steps >= 0
    T, B, I = x.shape
    H = params["w_hh"].shape[0]
    O = params["w_fc"].shape[0]
    HP = ((H + 127) // 128) * 128   # pad each half of the fused state to full lane tiles

    if hidden is None:
        h0 = jnp.zeros((B, H), jnp.float32)
        c0 = jnp.zeros((B, H), jnp.float32)
    else:
        h0, c0 = hidden

    # ---- Host-side layout plumbing (free relative to the kernel) ----
    x_flat = x.reshape(T * B, I)

    # Fused input-projection weight/bias: [input2h^T | input2context^T], biases folded.
    w_in = jnp.zeros((I, 2 * HP), jnp.float32)
    w_in = w_in.at[:, :H].set(params["w_ih"].T)
    w_in = w_in.at[:, HP:HP + H].set(params["w_ic"].T)
    b_in = jnp.zeros((1, 2 * HP), jnp.float32)
    b_in = b_in.at[:, :H].set(params["b_ih"] + params["b_hh"])
    b_in = b_in.at[:, HP:HP + H].set(params["b_cc"] + params["b_ic"])

    # Block-diagonal recurrent weight: [[h2h^T, 0], [0, context2context^T]].
    w_rec = jnp.zeros((2 * HP, 2 * HP), jnp.float32)
    w_rec = w_rec.at[:H, :H].set(params["w_hh"].T)
    w_rec = w_rec.at[HP:HP + H, HP:HP + H].set(params["w_cc"].T)

    w_fc_t = params["w_fc"].T                  # [H, O]
    b_fc = params["b_fc"]                      # [1, O]

    # Fused initial state [hidden | context]; padded lanes are zero and stay zero.
    s0 = jnp.zeros((B, 2 * HP), jnp.float32)
    s0 = s0.at[:, :H].set(h0)
    s0 = s0.at[:, HP:HP + H].set(c0)

    kernel = _make_kernel(T, B, int(num_steps), float(alpha), H, HP)

    # TODO(synk): on v7x, shard the batch axis across the 2 TensorCores with a
    # leading "parallel" grid axis and set vmem_limit_bytes / chunk T for large
    # T*B; at these shapes a single grid step on one core is optimal.
    out_flat, rnn_flat = pl.pallas_call(
        kernel,
        out_shape=(jax.ShapeDtypeStruct((T * B, O), jnp.float32),
                   jax.ShapeDtypeStruct((T * B, H), jnp.float32)),
        grid=(1,),                                   # whole recurrence in one step
        in_specs=[
            pl.BlockSpec((T * B, I), lambda i: (0, 0)),        # x (flattened time*batch)
            pl.BlockSpec((I, 2 * HP), lambda i: (0, 0)),       # fused input-proj weight
            pl.BlockSpec((2 * HP, 2 * HP), lambda i: (0, 0)),  # block-diag recurrent weight
            pl.BlockSpec((H, O), lambda i: (0, 0)),            # fc.weight^T
            pl.BlockSpec((1, 2 * HP), lambda i: (0, 0)),       # fused/folded input bias
            pl.BlockSpec((1, O), lambda i: (0, 0)),            # fc bias
            pl.BlockSpec((B, 2 * HP), lambda i: (0, 0)),       # fused initial state
        ],
        out_specs=(pl.BlockSpec((T * B, O), lambda i: (0, 0)),
                   pl.BlockSpec((T * B, H), lambda i: (0, 0))),
        scratch_shapes=[pltpu.VMEM((T * B, 2 * HP), jnp.float32)],  # hoisted input proj
        compiler_params=pltpu.CompilerParams(
            dimension_semantics=("arbitrary",)),
    )(x_flat, w_in, w_rec, w_fc_t, b_in, b_fc, s0)

    return out_flat.reshape(T, B, O), rnn_flat.reshape(T, B, H)


def init_params(key, input_size, hidden_size, output_size):
    """PyTorch nn.Linear-style init: U(-1/sqrt(fan_in), 1/sqrt(fan_in))."""
    def linear(k, out_f, in_f):
        kw, kb = jax.random.split(k)
        bound = 1.0 / math.sqrt(in_f)
        w = jax.random.uniform(kw, (out_f, in_f), jnp.float32, -bound, bound)
        b = jax.random.uniform(kb, (1, out_f), jnp.float32, -bound, bound)
        return w, b

    k1, k2, k3, k4, k5 = jax.random.split(key, 5)
    w_ih, b_ih = linear(k1, hidden_size, input_size)     # input2h
    w_hh, b_hh = linear(k2, hidden_size, hidden_size)    # h2h
    w_cc, b_cc = linear(k3, hidden_size, hidden_size)    # context2context
    w_ic, b_ic = linear(k4, hidden_size, input_size)     # input2context
    w_fc, b_fc = linear(k5, output_size, hidden_size)    # fc
    return dict(w_ih=w_ih, b_ih=b_ih, w_hh=w_hh, b_hh=b_hh,
                w_cc=w_cc, b_cc=b_cc, w_ic=w_ic, b_ic=b_ic,
                w_fc=w_fc, b_fc=b_fc)


def reference_forward(x, params, num_steps, alpha, hidden=None):
    """Pure-JAX mirror of ContextRNNNet.forward for verification."""
    T, B, _ = x.shape
    H = params["w_hh"].shape[0]
    if hidden is None:
        h = jnp.zeros((B, H), jnp.float32)
        c = jnp.zeros((B, H), jnp.float32)
    else:
        h, c = hidden
    outs = []
    for t in range(T):
        inp = x[t]
        for _ in range(num_steps):
            input_proj = inp @ params["w_ih"].T + params["b_ih"] + c
            h_new = jax.nn.relu(input_proj + h @ params["w_hh"].T + params["b_hh"])
            h = h * (1.0 - alpha) + h_new * alpha
            c_new = jax.nn.relu(c @ params["w_cc"].T + params["b_cc"]
                                + inp @ params["w_ic"].T + params["b_ic"])
            c = c * (1.0 - alpha) + c_new * alpha
        outs.append(h)
    rnn_out = jnp.stack(outs, 0)
    out = rnn_out @ params["w_fc"].T + params["b_fc"]
    return out, rnn_out


if __name__ == "__main__":
    # ContextRNNNet(input_size=4, hidden_size=32, output_size=4); dt=None -> alpha=1.0
    T, B, I, H, O = 8, 2, 4, 32, 4

    key = jax.random.PRNGKey(0)
    kx, kp = jax.random.split(key)
    x = jax.random.normal(kx, (T, B, I), jnp.float32)
    params = init_params(kp, I, H, O)

    # Default path: num_steps=1, alpha=1.0 (dt=None).
    out, rnn_out = context_rnn_forward(x, params, num_steps=1, alpha=1.0)
    jax.block_until_ready((out, rnn_out))
    ref_out, ref_rnn = reference_forward(x, params, num_steps=1, alpha=1.0)
    assert out.shape == (T, B, O) and rnn_out.shape == (T, B, H)
    assert jnp.allclose(out, ref_out, atol=1e-5, rtol=1e-5)
    assert jnp.allclose(rnn_out, ref_rnn, atol=1e-5, rtol=1e-5)

    # Leaky-integrator / multi-inner-step path (dt=25 -> alpha=0.25, num_steps=3),
    # exercises the fused block-diagonal recurrence + hoisted input projections.
    out2, rnn2 = context_rnn_forward(x, params, num_steps=3, alpha=0.25)
    jax.block_until_ready((out2, rnn2))
    ref_out2, ref_rnn2 = reference_forward(x, params, num_steps=3, alpha=0.25)
    assert jnp.allclose(out2, ref_out2, atol=1e-5, rtol=1e-5)
    assert jnp.allclose(rnn2, ref_rnn2, atol=1e-5, rtol=1e-5)

    print("KERNEL_OK")
</pallas_src>

<mosaic_0001>
module attributes {stable_mosaic.version = 11 : i64} {
  func.func @kernel(%arg0: i32, %arg1: memref<16x4xf32, #tpu.memory_space<vmem>>, %arg2: memref<4x256xf32, #tpu.memory_space<vmem>>, %arg3: memref<256x256xf32, #tpu.memory_space<vmem>>, %arg4: memref<32x4xf32, #tpu.memory_space<vmem>>, %arg5: memref<1x256xf32, #tpu.memory_space<vmem>>, %arg6: memref<1x4xf32, #tpu.memory_space<vmem>>, %arg7: memref<2x256xf32, #tpu.memory_space<vmem>>, %arg8: memref<16x4xf32, #tpu.memory_space<vmem>>, %arg9: memref<16x32xf32, #tpu.memory_space<vmem>>, %arg10: memref<16x256xf32, #tpu.memory_space<vmem>>) attributes {dimension_semantics = [#tpu.dimension_semantics<arbitrary>], iteration_bounds = array<i64: 1>, scalar_prefetch = 0 : i64, scratch_operands = 1 : i64, tpu.core_type = #tpu.core_type<tc>, window_params = [{pipeline_mode = #tpu.pipeline_mode<synchronous>, transform_indices = @transform_0, window_bounds = array<i64: 16, 4>}, {pipeline_mode = #tpu.pipeline_mode<synchronous>, transform_indices = @transform_1, window_bounds = array<i64: 4, 256>}, {pipeline_mode = #tpu.pipeline_mode<synchronous>, transform_indices = @transform_2, window_bounds = array<i64: 256, 256>}, {pipeline_mode = #tpu.pipeline_mode<synchronous>, transform_indices = @transform_3, window_bounds = array<i64: 32, 4>}, {pipeline_mode = #tpu.pipeline_mode<synchronous>, transform_indices = @transform_4, window_bounds = array<i64: 1, 256>}, {pipeline_mode = #tpu.pipeline_mode<synchronous>, transform_indices = @transform_5, window_bounds = array<i64: 1, 4>}, {pipeline_mode = #tpu.pipeline_mode<synchronous>, transform_indices = @transform_6, window_bounds = array<i64: 2, 256>}, {pipeline_mode = #tpu.pipeline_mode<synchronous>, transform_indices = @transform_7, window_bounds = array<i64: 16, 4>}, {pipeline_mode = #tpu.pipeline_mode<synchronous>, transform_indices = @transform_8, window_bounds = array<i64: 16, 32>}]} {
    %c0 = arith.constant 0 : index
    %c0_0 = arith.constant 0 : index
    %0 = vector.load %arg3[%c0, %c0_0] : memref<256x256xf32, #tpu.memory_space<vmem>>, vector<256x256xf32>
    %c0_1 = arith.constant 0 : index
    %c0_2 = arith.constant 0 : index
    %1 = vector.load %arg1[%c0_1, %c0_2] : memref<16x4xf32, #tpu.memory_space<vmem>>, vector<16x4xf32>
    %c0_3 = arith.constant 0 : index
    %c0_4 = arith.constant 0 : index
    %2 = vector.load %arg2[%c0_3, %c0_4] : memref<4x256xf32, #tpu.memory_space<vmem>>, vector<4x256xf32>
    %cst = arith.constant dense<0.000000e+00> : vector<16x256xf32>
    %3 = tpu.matmul %1, %2, %cst {dimension_numbers = #tpu.dot_dimension_numbers<[1], [0], [0], [1], [0, 0, 1, 1], [], []>} : vector<16x4xf32>, vector<4x256xf32>, vector<16x256xf32> -> vector<16x256xf32>
    %c0_5 = arith.constant 0 : index
    %c0_6 = arith.constant 0 : index
    %4 = vector.load %arg5[%c0_5, %c0_6] : memref<1x256xf32, #tpu.memory_space<vmem>>, vector<1x256xf32>
    %5 = vector.broadcast %4 : vector<1x256xf32> to vector<16x256xf32>
    %6 = arith.addf %3, %5 : vector<16x256xf32>
    %c0_7 = arith.constant 0 : index
    %c0_8 = arith.constant 0 : index
    %7 = vector.load %arg10[%c0_7, %c0_8] : memref<16x256xf32, #tpu.memory_space<vmem>>, vector<16x256xf32>
    tpu.vector_store %arg10[%c0_7, %c0_8], %6 {strides = array<i32>} : memref<16x256xf32, #tpu.memory_space<vmem>>, vector<16x256xf32>,
    %c0_9 = arith.constant 0 : index
    %c0_10 = arith.constant 0 : index
    %8 = vector.load %arg7[%c0_9, %c0_10] : memref<2x256xf32, #tpu.memory_space<vmem>>, vector<2x256xf32>
    %c0_11 = arith.constant 0 : index
    %c0_12 = arith.constant 0 : index
    %9 = vector.load %arg10[%c0_11, %c0_12] : memref<16x256xf32, #tpu.memory_space<vmem>>, vector<2x256xf32>
    %cst_13 = arith.constant dense<0.000000e+00> : vector<2x256xf32>
    %10 = tpu.matmul %8, %0, %cst_13 {dimension_numbers = #tpu.dot_dimension_numbers<[1], [0], [0], [1], [0, 0, 1, 1], [], []>} : vector<2x256xf32>, vector<256x256xf32>, vector<2x256xf32> -> vector<2x256xf32>
    %11 = arith.addf %9, %10 : vector<2x256xf32>
    %12 = vector.extract_strided_slice %11 {offsets = [0, 0], sizes = [2, 128], strides = [1, 1]} : vector<2x256xf32> to vector<2x128xf32>
    %13 = vector.extract_strided_slice %8 {offsets = [0, 128], sizes = [2, 128], strides = [1, 1]} : vector<2x256xf32> to vector<2x128xf32>
    %14 = arith.addf %12, %13 : vector<2x128xf32>
    %cst_14 = arith.constant 0.000000e+00 : f32
    %15 = vector.broadcast %cst_14 : f32 to vector<2x128xf32>
    %16 = arith.maximumf %14, %15 : vector<2x128xf32>
    %17 = vector.extract_strided_slice %11 {offsets = [0, 128], sizes = [2, 128], strides = [1, 1]} : vector<2x256xf32> to vector<2x128xf32>
    %cst_15 = arith.constant 0.000000e+00 : f32
    %18 = vector.broadcast %cst_15 : f32 to vector<2x128xf32>
    %19 = arith.maximumf %17, %18 : vector<2x128xf32>
    %cst_16 = arith.constant 0.000000e+00 : f32
    %20 = vector.broadcast %cst_16 : f32 to vector<2x256xf32>
    %21 = arith.mulf %8, %20 : vector<2x256xf32>
    %22 = tpu.concatenate %16, %19 in 1 : vector<2x128xf32>, vector<2x128xf32> -> vector<2x256xf32>
    %cst_17 = arith.constant 1.000000e+00 : f32
    %23 = vector.broadcast %cst_17 : f32 to vector<2x256xf32>
    %24 = arith.mulf %22, %23 : vector<2x256xf32>
    %25 = arith.addf %21, %24 : vector<2x256xf32>
    %26 = vector.extract_strided_slice %25 {offsets = [0, 0], sizes = [2, 32], strides = [1, 1]} : vector<2x256xf32> to vector<2x32xf32>
    %c0_18 = arith.constant 0 : index
    %c0_19 = arith.constant 0 : index
    %27 = vector.load %arg9[%c0_18, %c0_19] : memref<16x32xf32, #tpu.memory_space<vmem>>, vector<2x32xf32>
    tpu.vector_store %arg9[%c0_18, %c0_19], %26 {strides = array<i32>} : memref<16x32xf32, #tpu.memory_space<vmem>>, vector<2x32xf32>,
    %c2 = arith.constant 2 : index
    %c0_20 = arith.constant 0 : index
    %28 = vector.load %arg10[%c2, %c0_20] : memref<16x256xf32, #tpu.memory_space<vmem>>, vector<2x256xf32>
    %cst_21 = arith.constant dense<0.000000e+00> : vector<2x256xf32>
    %29 = tpu.matmul %25, %0, %cst_21 {dimension_numbers = #tpu.dot_dimension_numbers<[1], [0], [0], [1], [0, 0, 1, 1], [], []>} : vector<2x256xf32>, vector<256x256xf32>, vector<2x256xf32> -> vector<2x256xf32>
    %30 = arith.addf %28, %29 : vector<2x256xf32>
    %31 = vector.extract_strided_slice %30 {offsets = [0, 0], sizes = [2, 128], strides = [1, 1]} : vector<2x256xf32> to vector<2x128xf32>
    %32 = vector.extract_strided_slice %25 {offsets = [0, 128], sizes = [2, 128], strides = [1, 1]} : vector<2x256xf32> to vector<2x128xf32>
    %33 = arith.addf %31, %32 : vector<2x128xf32>
    %cst_22 = arith.constant 0.000000e+00 : f32
    %34 = vector.broadcast %cst_22 : f32 to vector<2x128xf32>
    %35 = arith.maximumf %33, %34 : vector<2x128xf32>
    %36 = vector.extract_strided_slice %30 {offsets = [0, 128], sizes = [2, 128], strides = [1, 1]} : vector<2x256xf32> to vector<2x128xf32>
    %cst_23 = arith.constant 0.000000e+00 : f32
    %37 = vector.broadcast %cst_23 : f32 to vector<2x128xf32>
    %38 = arith.maximumf %36, %37 : vector<2x128xf32>
    %cst_24 = arith.constant 0.000000e+00 : f32
    %39 = vector.broadcast %cst_24 : f32 to vector<2x256xf32>
    %40 = arith.mulf %25, %39 : vector<2x256xf32>
    %41 = tpu.concatenate %35, %38 in 1 : vector<2x128xf32>, vector<2x128xf32> -> vector<2x256xf32>
    %cst_25 = arith.constant 1.000000e+00 : f32
    %42 = vector.broadcast %cst_25 : f32 to vector<2x256xf32>
    %43 = arith.mulf %41, %42 : vector<2x256xf32>
    %44 = arith.addf %40, %43 : vector<2x256xf32>
    %45 = vector.extract_strided_slice %44 {offsets = [0, 0], sizes = [2, 32], strides = [1, 1]} : vector<2x256xf32> to vector<2x32xf32>
    %c2_26 = arith.constant 2 : index
    %c0_27 = arith.constant 0 : index
    %46 = vector.load %arg9[%c2_26, %c0_27] : memref<16x32xf32, #tpu.memory_space<vmem>>, vector<2x32xf32>
    tpu.vector_store %arg9[%c2_26, %c0_27], %45 {strides = array<i32>} : memref<16x32xf32, #tpu.memory_space<vmem>>, vector<2x32xf32>,
    %c4 = arith.constant 4 : index
    %c0_28 = arith.constant 0 : index
    %47 = vector.load %arg10[%c4, %c0_28] : memref<16x256xf32, #tpu.memory_space<vmem>>, vector<2x256xf32>
    %cst_29 = arith.constant dense<0.000000e+00> : vector<2x256xf32>
    %48 = tpu.matmul %44, %0, %cst_29 {dimension_numbers = #tpu.dot_dimension_numbers<[1], [0], [0], [1], [0, 0, 1, 1], [], []>} : vector<2x256xf32>, vector<256x256xf32>, vector<2x256xf32> -> vector<2x256xf32>
    %49 = arith.addf %47, %48 : vector<2x256xf32>
    %50 = vector.extract_strided_slice %49 {offsets = [0, 0], sizes = [2, 128], strides = [1, 1]} : vector<2x256xf32> to vector<2x128xf32>
    %51 = vector.extract_strided_slice %44 {offsets = [0, 128], sizes = [2, 128], strides = [1, 1]} : vector<2x256xf32> to vector<2x128xf32>
    %52 = arith.addf %50, %51 : vector<2x128xf32>
    %cst_30 = arith.constant 0.000000e+00 : f32
    %53 = vector.broadcast %cst_30 : f32 to vector<2x128xf32>
    %54 = arith.maximumf %52, %53 : vector<2x128xf32>
    %55 = vector.extract_strided_slice %49 {offsets = [0, 128], sizes = [2, 128], strides = [1, 1]} : vector<2x256xf32> to vector<2x128xf32>
    %cst_31 = arith.constant 0.000000e+00 : f32
    %56 = vector.broadcast %cst_31 : f32 to vector<2x128xf32>
    %57 = arith.maximumf %55, %56 : vector<2x128xf32>
    %cst_32 = arith.constant 0.000000e+00 : f32
    %58 = vector.broadcast %cst_32 : f32 to vector<2x256xf32>
    %59 = arith.mulf %44, %58 : vector<2x256xf32>
    %60 = tpu.concatenate %54, %57 in 1 : vector<2x128xf32>, vector<2x128xf32> -> vector<2x256xf32>
    %cst_33 = arith.constant 1.000000e+00 : f32
    %61 = vector.broadcast %cst_33 : f32 to vector<2x256xf32>
    %62 = arith.mulf %60, %61 : vector<2x256xf32>
    %63 = arith.addf %59, %62 : vector<2x256xf32>
    %64 = vector.extract_strided_slice %63 {offsets = [0, 0], sizes = [2, 32], strides = [1, 1]} : vector<2x256xf32> to vector<2x32xf32>
    %c4_34 = arith.constant 4 : index
    %c0_35 = arith.constant 0 : index
    %65 = vector.load %arg9[%c4_34, %c0_35] : memref<16x32xf32, #tpu.memory_space<vmem>>, vector<2x32xf32>
    tpu.vector_store %arg9[%c4_34, %c0_35], %64 {strides = array<i32>} : memref<16x32xf32, #tpu.memory_space<vmem>>, vector<2x32xf32>,
    %c6 = arith.constant 6 : index
    %c0_36 = arith.constant 0 : index
    %66 = vector.load %arg10[%c6, %c0_36] : memref<16x256xf32, #tpu.memory_space<vmem>>, vector<2x256xf32>
    %cst_37 = arith.constant dense<0.000000e+00> : vector<2x256xf32>
    %67 = tpu.matmul %63, %0, %cst_37 {dimension_numbers = #tpu.dot_dimension_numbers<[1], [0], [0], [1], [0, 0, 1, 1], [], []>} : vector<2x256xf32>, vector<256x256xf32>, vector<2x256xf32> -> vector<2x256xf32>
    %68 = arith.addf %66, %67 : vector<2x256xf32>
    %69 = vector.extract_strided_slice %68 {offsets = [0, 0], sizes = [2, 128], strides = [1, 1]} : vector<2x256xf32> to vector<2x128xf32>
    %70 = vector.extract_strided_slice %63 {offsets = [0, 128], sizes = [2, 128], strides = [1, 1]} : vector<2x256xf32> to vector<2x128xf32>
    %71 = arith.addf %69, %70 : vector<2x128xf32>
    %cst_38 = arith.constant 0.000000e+00 : f32
    %72 = vector.broadcast %cst_38 : f32 to vector<2x128xf32>
    %73 = arith.maximumf %71, %72 : vector<2x128xf32>
    %74 = vector.extract_strided_slice %68 {offsets = [0, 128], sizes = [2, 128], strides = [1, 1]} : vector<2x256xf32> to vector<2x128xf32>
    %cst_39 = arith.constant 0.000000e+00 : f32
    %75 = vector.broadcast %cst_39 : f32 to vector<2x128xf32>
    %76 = arith.maximumf %74, %75 : vector<2x128xf32>
    %cst_40 = arith.constant 0.000000e+00 : f32
    %77 = vector.broadcast %cst_40 : f32 to vector<2x256xf32>
    %78 = arith.mulf %63, %77 : vector<2x256xf32>
    %79 = tpu.concatenate %73, %76 in 1 : vector<2x128xf32>, vector<2x128xf32> -> vector<2x256xf32>
    %cst_41 = arith.constant 1.000000e+00 : f32
    %80 = vector.broadcast %cst_41 : f32 to vector<2x256xf32>
    %81 = arith.mulf %79, %80 : vector<2x256xf32>
    %82 = arith.addf %78, %81 : vector<2x256xf32>
    %83 = vector.extract_strided_slice %82 {offsets = [0, 0], sizes = [2, 32], strides = [1, 1]} : vector<2x256xf32> to vector<2x32xf32>
    %c6_42 = arith.constant 6 : index
    %c0_43 = arith.constant 0 : index
    %84 = vector.load %arg9[%c6_42, %c0_43] : memref<16x32xf32, #tpu.memory_space<vmem>>, vector<2x32xf32>
    tpu.vector_store %arg9[%c6_42, %c0_43], %83 {strides = array<i32>} : memref<16x32xf32, #tpu.memory_space<vmem>>, vector<2x32xf32>,
    %c8 = arith.constant 8 : index
    %c0_44 = arith.constant 0 : index
    %85 = vector.load %arg10[%c8, %c0_44] : memref<16x256xf32, #tpu.memory_space<vmem>>, vector<2x256xf32>
    %cst_45 = arith.constant dense<0.000000e+00> : vector<2x256xf32>
    %86 = tpu.matmul %82, %0, %cst_45 {dimension_numbers = #tpu.dot_dimension_numbers<[1], [0], [0], [1], [0, 0, 1, 1], [], []>} : vector<2x256xf32>, vector<256x256xf32>, vector<2x256xf32> -> vector<2x256xf32>
    %87 = arith.addf %85, %86 : vector<2x256xf32>
    %88 = vector.extract_strided_slice %87 {offsets = [0, 0], sizes = [2, 128], strides = [1, 1]} : vector<2x256xf32> to vector<2x128xf32>
    %89 = vector.extract_strided_slice %82 {offsets = [0, 128], sizes = [2, 128], strides = [1, 1]} : vector<2x256xf32> to vector<2x128xf32>
    %90 = arith.addf %88, %89 : vector<2x128xf32>
    %cst_46 = arith.constant 0.000000e+00 : f32
    %91 = vector.broadcast %cst_46 : f32 to vector<2x128xf32>
    %92 = arith.maximumf %90, %91 : vector<2x128xf32>
    %93 = vector.extract_strided_slice %87 {offsets = [0, 128], sizes = [2, 128], strides = [1, 1]} : vector<2x256xf32> to vector<2x128xf32>
    %cst_47 = arith.constant 0.000000e+00 : f32
    %94 = vector.broadcast %cst_47 : f32 to vector<2x128xf32>
    %95 = arith.maximumf %93, %94 : vector<2x128xf32>
    %cst_48 = arith.constant 0.000000e+00 : f32
    %96 = vector.broadcast %cst_48 : f32 to vector<2x256xf32>
    %97 = arith.mulf %82, %96 : vector<2x256xf32>
    %98 = tpu.concatenate %92, %95 in 1 : vector<2x128xf32>, vector<2x128xf32> -> vector<2x256xf32>
    %cst_49 = arith.constant 1.000000e+00 : f32
    %99 = vector.broadcast %cst_49 : f32 to vector<2x256xf32>
    %100 = arith.mulf %98, %99 : vector<2x256xf32>
    %101 = arith.addf %97, %100 : vector<2x256xf32>
    %102 = vector.extract_strided_slice %101 {offsets = [0, 0], sizes = [2, 32], strides = [1, 1]} : vector<2x256xf32> to vector<2x32xf32>
    %c8_50 = arith.constant 8 : index
    %c0_51 = arith.constant 0 : index
    %103 = vector.load %arg9[%c8_50, %c0_51] : memref<16x32xf32, #tpu.memory_space<vmem>>, vector<2x32xf32>
    tpu.vector_store %arg9[%c8_50, %c0_51], %102 {strides = array<i32>} : memref<16x32xf32, #tpu.memory_space<vmem>>, vector<2x32xf32>,
    %c10 = arith.constant 10 : index
    %c0_52 = arith.constant 0 : index
    %104 = vector.load %arg10[%c10, %c0_52] : memref<16x256xf32, #tpu.memory_space<vmem>>, vector<2x256xf32>
    %cst_53 = arith.constant dense<0.000000e+00> : vector<2x256xf32>
    %105 = tpu.matmul %101, %0, %cst_53 {dimension_numbers = #tpu.dot_dimension_numbers<[1], [0], [0], [1], [0, 0, 1, 1], [], []>} : vector<2x256xf32>, vector<256x256xf32>, vector<2x256xf32> -> vector<2x256xf32>
    %106 = arith.addf %104, %105 : vector<2x256xf32>
    %107 = vector.extract_strided_slice %106 {offsets = [0, 0], sizes = [2, 128], strides = [1, 1]} : vector<2x256xf32> to vector<2x128xf32>
    %108 = vector.extract_strided_slice %101 {offsets = [0, 128], sizes = [2, 128], strides = [1, 1]} : vector<2x256xf32> to vector<2x128xf32>
    %109 = arith.addf %107, %108 : vector<2x128xf32>
    %cst_54 = arith.constant 0.000000e+00 : f32
    %110 = vector.broadcast %cst_54 : f32 to vector<2x128xf32>
    %111 = arith.maximumf %109, %110 : vector<2x128xf32>
    %112 = vector.extract_strided_slice %106 {offsets = [0, 128], sizes = [2, 128], strides = [1, 1]} : vector<2x256xf32> to vector<2x128xf32>
    %cst_55 = arith.constant 0.000000e+00 : f32
    %113 = vector.broadcast %cst_55 : f32 to vector<2x128xf32>
    %114 = arith.maximumf %112, %113 : vector<2x128xf32>
    %cst_56 = arith.constant 0.000000e+00 : f32
    %115 = vector.broadcast %cst_56 : f32 to vector<2x256xf32>
    %116 = arith.mulf %101, %115 : vector<2x256xf32>
    %117 = tpu.concatenate %111, %114 in 1 : vector<2x128xf32>, vector<2x128xf32> -> vector<2x256xf32>
    %cst_57 = arith.constant 1.000000e+00 : f32
    %118 = vector.broadcast %cst_57 : f32 to vector<2x256xf32>
    %119 = arith.mulf %117, %118 : vector<2x256xf32>
    %120 = arith.addf %116, %119 : vector<2x256xf32>
    %121 = vector.extract_strided_slice %120 {offsets = [0, 0], sizes = [2, 32], strides = [1, 1]} : vector<2x256xf32> to vector<2x32xf32>
    %c10_58 = arith.constant 10 : index
    %c0_59 = arith.constant 0 : index
    %122 = vector.load %arg9[%c10_58, %c0_59] : memref<16x32xf32, #tpu.memory_space<vmem>>, vector<2x32xf32>
    tpu.vector_store %arg9[%c10_58, %c0_59], %121 {strides = array<i32>} : memref<16x32xf32, #tpu.memory_space<vmem>>, vector<2x32xf32>,
    %c12 = arith.constant 12 : index
    %c0_60 = arith.constant 0 : index
    %123 = vector.load %arg10[%c12, %c0_60] : memref<16x256xf32, #tpu.memory_space<vmem>>, vector<2x256xf32>
    %cst_61 = arith.constant dense<0.000000e+00> : vector<2x256xf32>
    %124 = tpu.matmul %120, %0, %cst_61 {dimension_numbers = #tpu.dot_dimension_numbers<[1], [0], [0], [1], [0, 0, 1, 1], [], []>} : vector<2x256xf32>, vector<256x256xf32>, vector<2x256xf32> -> vector<2x256xf32>
    %125 = arith.addf %123, %124 : vector<2x256xf32>
    %126 = vector.extract_strided_slice %125 {offsets = [0, 0], sizes = [2, 128], strides = [1, 1]} : vector<2x256xf32> to vector<2x128xf32>
    %127 = vector.extract_strided_slice %120 {offsets = [0, 128], sizes = [2, 128], strides = [1, 1]} : vector<2x256xf32> to vector<2x128xf32>
    %128 = arith.addf %126, %127 : vector<2x128xf32>
    %cst_62 = arith.constant 0.000000e+00 : f32
    %129 = vector.broadcast %cst_62 : f32 to vector<2x128xf32>
    %130 = arith.maximumf %128, %129 : vector<2x128xf32>
    %131 = vector.extract_strided_slice %125 {offsets = [0, 128], sizes = [2, 128], strides = [1, 1]} : vector<2x256xf32> to vector<2x128xf32>
    %cst_63 = arith.constant 0.000000e+00 : f32
    %132 = vector.broadcast %cst_63 : f32 to vector<2x128xf32>
    %133 = arith.maximumf %131, %132 : vector<2x128xf32>
    %cst_64 = arith.constant 0.000000e+00 : f32
    %134 = vector.broadcast %cst_64 : f32 to vector<2x256xf32>
    %135 = arith.mulf %120, %134 : vector<2x256xf32>
    %136 = tpu.concatenate %130, %133 in 1 : vector<2x128xf32>, vector<2x128xf32> -> vector<2x256xf32>
    %cst_65 = arith.constant 1.000000e+00 : f32
    %137 = vector.broadcast %cst_65 : f32 to vector<2x256xf32>
    %138 = arith.mulf %136, %137 : vector<2x256xf32>
    %139 = arith.addf %135, %138 : vector<2x256xf32>
    %140 = vector.extract_strided_slice %139 {offsets = [0, 0], sizes = [2, 32], strides = [1, 1]} : vector<2x256xf32> to vector<2x32xf32>
    %c12_66 = arith.constant 12 : index
    %c0_67 = arith.constant 0 : index
    %141 = vector.load %arg9[%c12_66, %c0_67] : memref<16x32xf32, #tpu.memory_space<vmem>>, vector<2x32xf32>
    tpu.vector_store %arg9[%c12_66, %c0_67], %140 {strides = array<i32>} : memref<16x32xf32, #tpu.memory_space<vmem>>, vector<2x32xf32>,
    %c14 = arith.constant 14 : index
    %c0_68 = arith.constant 0 : index
    %142 = vector.load %arg10[%c14, %c0_68] : memref<16x256xf32, #tpu.memory_space<vmem>>, vector<2x256xf32>
    %cst_69 = arith.constant dense<0.000000e+00> : vector<2x256xf32>
    %143 = tpu.matmul %139, %0, %cst_69 {dimension_numbers = #tpu.dot_dimension_numbers<[1], [0], [0], [1], [0, 0, 1, 1], [], []>} : vector<2x256xf32>, vector<256x256xf32>, vector<2x256xf32> -> vector<2x256xf32>
    %144 = arith.addf %142, %143 : vector<2x256xf32>
    %145 = vector.extract_strided_slice %144 {offsets = [0, 0], sizes = [2, 128], strides = [1, 1]} : vector<2x256xf32> to vector<2x128xf32>
    %146 = vector.extract_strided_slice %139 {offsets = [0, 128], sizes = [2, 128], strides = [1, 1]} : vector<2x256xf32> to vector<2x128xf32>
    %147 = arith.addf %145, %146 : vector<2x128xf32>
    %cst_70 = arith.constant 0.000000e+00 : f32
    %148 = vector.broadcast %cst_70 : f32 to vector<2x128xf32>
    %149 = arith.maximumf %147, %148 : vector<2x128xf32>
    %150 = vector.extract_strided_slice %144 {offsets = [0, 128], sizes = [2, 128], strides = [1, 1]} : vector<2x256xf32> to vector<2x128xf32>
    %cst_71 = arith.constant 0.000000e+00 : f32
    %151 = vector.broadcast %cst_71 : f32 to vector<2x128xf32>
    %152 = arith.maximumf %150, %151 : vector<2x128xf32>
    %cst_72 = arith.constant 0.000000e+00 : f32
    %153 = vector.broadcast %cst_72 : f32 to vector<2x256xf32>
    %154 = arith.mulf %139, %153 : vector<2x256xf32>
    %155 = tpu.concatenate %149, %152 in 1 : vector<2x128xf32>, vector<2x128xf32> -> vector<2x256xf32>
    %cst_73 = arith.constant 1.000000e+00 : f32
    %156 = vector.broadcast %cst_73 : f32 to vector<2x256xf32>
    %157 = arith.mulf %155, %156 : vector<2x256xf32>
    %158 = arith.addf %154, %157 : vector<2x256xf32>
    %159 = vector.extract_strided_slice %158 {offsets = [0, 0], sizes = [2, 32], strides = [1, 1]} : vector<2x256xf32> to vector<2x32xf32>
    %c14_74 = arith.constant 14 : index
    %c0_75 = arith.constant 0 : index
    %160 = vector.load %arg9[%c14_74, %c0_75] : memref<16x32xf32, #tpu.memory_space<vmem>>, vector<2x32xf32>
    tpu.vector_store %arg9[%c14_74, %c0_75], %159 {strides = array<i32>} : memref<16x32xf32, #tpu.memory_space<vmem>>, vector<2x32xf32>,
    %c0_76 = arith.constant 0 : index
    %c0_77 = arith.constant 0 : index
    %161 = vector.load %arg9[%c0_76, %c0_77] : memref<16x32xf32, #tpu.memory_space<vmem>>, vector<16x32xf32>
    %c0_78 = arith.constant 0 : index
    %c0_79 = arith.constant 0 : index
    %162 = vector.load %arg4[%c0_78, %c0_79] : memref<32x4xf32, #tpu.memory_space<vmem>>, vector<32x4xf32>
    %cst_80 = arith.constant dense<0.000000e+00> : vector<16x4xf32>
    %163 = tpu.matmul %161, %162, %cst_80 {dimension_numbers = #tpu.dot_dimension_numbers<[1], [0], [0], [1], [0, 0, 1, 1], [], []>} : vector<16x32xf32>, vector<32x4xf32>, vector<16x4xf32> -> vector<16x4xf32>
    %c0_81 = arith.constant 0 : index
    %c0_82 = arith.constant 0 : index
    %164 = vector.load %arg6[%c0_81, %c0_82] : memref<1x4xf32, #tpu.memory_space<vmem>>, vector<1x4xf32>
    %165 = vector.broadcast %164 : vector<1x4xf32> to vector<16x4xf32>
    %166 = arith.addf %163, %165 : vector<16x4xf32>
    %c0_83 = arith.constant 0 : index
    %c0_84 = arith.constant 0 : index
    %167 = vector.load %arg8[%c0_83, %c0_84] : memref<16x4xf32, #tpu.memory_space<vmem>>, vector<16x4xf32>
    tpu.vector_store %arg8[%c0_83, %c0_84], %166 {strides = array<i32>} : memref<16x4xf32, #tpu.memory_space<vmem>>, vector<16x4xf32>,
    return
  }
  func.func @transform_0(%arg0: i32) -> (i32, i32) {
    %c0_i32 = arith.constant 0 : i32
    %c0_i32_0 = arith.constant 0 : i32
    %c0_i32_1 = arith.constant 0 : i32
    return %c0_i32, %c0_i32_0 : i32, i32
  }
  func.func @transform_1(%arg0: i32) -> (i32, i32) {
    %c0_i32 = arith.constant 0 : i32
    %c0_i32_0 = arith.constant 0 : i32
    %c0_i32_1 = arith.constant 0 : i32
    return %c0_i32, %c0_i32_0 : i32, i32
  }
  func.func @transform_2(%arg0: i32) -> (i32, i32) {
    %c0_i32 = arith.constant 0 : i32
    %c0_i32_0 = arith.constant 0 : i32
    %c0_i32_1 = arith.constant 0 : i32
    return %c0_i32, %c0_i32_0 : i32, i32
  }
  func.func @transform_3(%arg0: i32) -> (i32, i32) {
    %c0_i32 = arith.constant 0 : i32
    %c0_i32_0 = arith.constant 0 : i32
    %c0_i32_1 = arith.constant 0 : i32
    return %c0_i32, %c0_i32_0 : i32, i32
  }
  func.func @transform_4(%arg0: i32) -> (i32, i32) {
    %c0_i32 = arith.constant 0 : i32
    %c0_i32_0 = arith.constant 0 : i32
    %c0_i32_1 = arith.constant 0 : i32
    return %c0_i32, %c0_i32_0 : i32, i32
  }
  func.func @transform_5(%arg0: i32) -> (i32, i32) {
    %c0_i32 = arith.constant 0 : i32
    %c0_i32_0 = arith.constant 0 : i32
    %c0_i32_1 = arith.constant 0 : i32
    return %c0_i32, %c0_i32_0 : i32, i32
  }
  func.func @transform_6(%arg0: i32) -> (i32, i32) {
    %c0_i32 = arith.constant 0 : i32
    %c0_i32_0 = arith.constant 0 : i32
    %c0_i32_1 = arith.constant 0 : i32
    return %c0_i32, %c0_i32_0 : i32, i32
  }
  func.func @transform_7(%arg0: i32) -> (i32, i32) {
    %c0_i32 = arith.constant 0 : i32
    %c0_i32_0 = arith.constant 0 : i32
    %c0_i32_1 = arith.constant 0 : i32
    return %c0_i32, %c0_i32_0 : i32, i32
  }
  func.func @transform_8(%arg0: i32) -> (i32, i32) {
    %c0_i32 = arith.constant 0 : i32
    %c0_i32_0 = arith.constant 0 : i32
    %c0_i32_1 = arith.constant 0 : i32
    return %c0_i32, %c0_i32_0 : i32, i32
  }
}

</mosaic_0001>

<bundles_post_ra>
// kernel: tpu_custom_call.1
= control target key start
LH: loop header
LB: loop body
LE: loop exit
PB: predicated region body
PF: predicated region fallthrough
CT: control target
= control target key end

     0   :  { %14 = vsyncpa [#allocation4], 0  ;;  %s2195_s0 = inlined_call_operand.vmem [shape: f32[16,4], index: 0, kind: input, shape index: {}]   ;;  %s2196_s1 = inlined_call_operand.vmem [shape: f32[4,256], index: 1, kind: input, shape index: {}]   ;;  %s2197_s2 = inlined_call_operand.hbm [shape: f32[256,256], index: 2, kind: input, shape index: {}]   ;;  %s2198_s3 = inlined_call_operand.vmem [shape: f32[32,4], index: 3, kind: input, shape index: {}]   ;;  %s2199_s4 = inlined_call_operand.vmem [shape: f32[1,256], index: 4, kind: input, shape index: {}]   ;;  %s2200_s5 = inlined_call_operand.vmem [shape: f32[1,4], index: 5, kind: input, shape index: {}]   ;;  %s2201_s6 = inlined_call_operand.vmem [shape: f32[2,256], index: 6, kind: input, shape index: {}]   ;;  %s2202_s7 = inlined_call_operand.vmem [shape: f32[16,4], index: 7, kind: output, shape index: {0}]   ;;  %s2203_s8 = inlined_call_operand.hbm [shape: f32[16,32], index: 8, kind: output, shape index: {1}]  }
   0x1   :  { %15 = vsyncpa [#allocation5], 0  ;;  %s24_s29 = sshll.u32 %s2197_s2, 4  ;;  %s1273_s30 = smov [#allocation3]   ;;  %s25_s29 = int_to_ptr.hbm [resolvable:$true] %s24_s29 }
   0x2   :  { %s26_s9 = sshll.u32 %s1273_s30, 4  ;;  %s1274_s10 = smov 256   ;;  %s27_s9 = int_to_ptr.vmem [resolvable:$true] %s26_s9 }
   0x3   :  { %s1275_s11 = smov 16  }
   0x4   :  { %32 = dma.hbm_to_vmem [thread:$0]  %s25_s29, 8192, %s27_s9, [#allocation4], %s1274_s10, %s1274_s10, %s1275_s11  }
   0x5   :  { %1269 = dma.done.wait [#allocation4], 8192  }
   0x6   :  { %1270 = vsyncadd [#allocation4], 4294959104  ;;  %v1327_v0 = vld [vmem:[#allocation3 + $0xf0] sm:$0xff]  ;;  %v1331_v2 = vld [vmem:[#allocation3 + $0xe0] sm:$0xff]  ;;  %vm129_vm0 = vcmask 1043456   ;;  %vm122_vm1 = vcmask 31744  }
   0x7   :  { %v1329_v1 = vld [vmem:[#allocation3 + $0x1f0] sm:$0xff]  ;;  %193 = vmatpush.msra.mxu2 %v1327_v0  ;;  %v1335_v3 = vld [vmem:[#allocation3 + $0x1e0] sm:$0xff]  ;;  %v111_v6 = vld [vmem:[%s2196_s1] sm:$0xff]  ;;  %vm285_vm2 = vcmask 1041408   ;;  %vm289_vm3 = vcmask 254976   ;;  %vm1083_vm4 = vcmask 261120  }
   0x8   :  { %213 = vmatpush.msra.mxu3 %v1329_v1  ;;  %v1337_v4 = vld [vmem:[#allocation3 + $0xd0] sm:$0xff]  ;;  %119 = vst [vmem:[#allocation1] ss:$2 sm:$0xff] %v111_v6  ;;  %v1346_v7 = vld [vmem:[#allocation3 + $0xc0] sm:$0xff]  ;;  %v1361_v11 = vld [vmem:[%s2201_s6] sm:$0xf] }
   0x9   :  { %v1339_v5 = vld [vmem:[#allocation3 + $0x1d0] sm:$0xff]  ;;  %194 = vmatpush.msra.mxu2 %v1331_v2  ;;  %v1348_v8 = vld [vmem:[#allocation3 + $0x1c0] sm:$0xff]  ;;  %2268 = vst [vmem:[#allocation9_spill] sm:$0xff] %v1361_v11  ;;  %v1363_v12 = vld [vmem:[#allocation3 + $0xf8] sm:$0xff]  ;;  %s1276_s28 = smov [#allocation6]   ;;  %s1123_s9 = sshll.u32 %s2203_s8, 4  ;;  %s1124_s9 = int_to_ptr.hbm [resolvable:$true] %s1123_s9 }
   0xa   :  { %214 = vmatpush.msra.mxu3 %v1335_v3  ;;  %v1352_v9 = vld [vmem:[#allocation3 + $0xb0] sm:$0xff]  ;;  %v1367_v13 = vld [vmem:[#allocation3 + $0x1f8] sm:$0xff]  ;;  %v1369_v14 = vld [vmem:[#allocation3 + $0xa0] sm:$0xff]  ;;  %s1277_s10 = smov 128   ;;  %s1278_s11 = smov 8  }
   0xb   :  { %195 = vmatpush.msra.mxu2 %v1337_v4  ;;  %v1354_v10 = vld [vmem:[#allocation3 + $0x1b0] sm:$0xff]  ;;  %v1371_v15 = vld [vmem:[#allocation3 + $0x1a0] sm:$0xff]  ;;  %v1374_v18 = vld [vmem:[#allocation3 + $0xe8] sm:$0xff] }
   0xc   :  { %215 = vmatpush.msra.mxu3 %v1339_v5  ;;  %v1376_v19 = vld [vmem:[#allocation3 + $0x1e8] sm:$0xff]  ;;  %v1380_v20 = vld [vmem:[#allocation3 + $0x90] sm:$0xff]  ;;  %v1386_v22 = vld [vmem:[#allocation3 + $0xd8] sm:$0xff] }
   0xd   :  { %196 = vmatpush.msra.mxu2 %v1346_v7  ;;  %v1382_v21 = vld [vmem:[#allocation3 + $0x190] sm:$0xff]  ;;  %v1388_v23 = vld [vmem:[#allocation3 + $0x1d8] sm:$0xff]  ;;  %v1392_v24 = vld [vmem:[#allocation3 + $0x80] sm:$0xff] }
   0xe   :  { %216 = vmatpush.msra.mxu3 %v1348_v8  ;;  %v1394_v25 = vld [vmem:[#allocation3 + $0x180] sm:$0xff]  ;;  %v1398_v26 = vld [vmem:[#allocation3 + $0xc8] sm:$0xff]  ;;  %v1404_v28 = vld [vmem:[#allocation3 + $0x70] sm:$0xff] }
   0xf   :  { %197 = vmatpush.msra.mxu2 %v1352_v9  ;;  %v120_v16 = vld.sshfl [vmem:[#allocation1] sm:$0xff pattern:$0x75316420]  ;;  %v121_v17 = vld.sshfl [vmem:[#allocation1 + $0x8] sm:$0xff pattern:$0x75316420] }
  0x10   :  { %217 = vmatpush.msra.mxu3 %v1354_v10  ;;  %1138 = vmatpush.msk.msra.mxu0 %vm129_vm0, %v120_v16  ;;  %188 = vst [vmem:[#allocation1] ss:$4 sm:$0xff] %v1361_v11  ;;  %v1400_v27 = vld [vmem:[#allocation3 + $0x1c8] sm:$0xff]  ;;  %v1406_v29 = vld [vmem:[#allocation3 + $0x170] sm:$0xff]  ;;  %v1410_v30 = vld [vmem:[#allocation3 + $0xb8] sm:$0xff] }
  0x11   :  { %1141 = vmatpush.msk.msra.mxu1 %vm129_vm0, %v121_v17  ;;  %198 = vmatpush.msra.mxu2 %v1369_v14  ;;  %v1412_v31 = vld [vmem:[#allocation3 + $0x1b8] sm:$0xff]  ;;  %v1416_v32 = vld [vmem:[#allocation3 + $0x60] sm:$0xff]  ;;  %v1420_v34 = vld [vmem:[#allocation3 + $0xa8] sm:$0xff] }
  0x12   :  { %233 = vmatpush.msrb.mxu0 %v1363_v12  ;;  %218 = vmatpush.msra.mxu3 %v1371_v15  ;;  %v1418_v33 = vld [vmem:[#allocation3 + $0x160] sm:$0xff]  ;;  %v1424_v35 = vld [vmem:[#allocation3 + $0x1a8] sm:$0xff]  ;;  %v1426_v36 = vld [vmem:[#allocation3 + $0x50] sm:$0xff] }
  0x13   :  { %253 = vmatpush.msrb.mxu1 %v1367_v13  ;;  %199 = vmatpush.msra.mxu2 %v1380_v20  ;;  %v1428_v37 = vld [vmem:[#allocation3 + $0x150] sm:$0xff]  ;;  %v1438_v40 = vld [vmem:[#allocation3 + $0x98] sm:$0xff]  ;;  %v1445_v42 = vld [vmem:[#allocation3 + $0x40] sm:$0xff] }
  0x14   :  { %234 = vmatpush.msrb.mxu0 %v1374_v18  ;;  %219 = vmatpush.msra.mxu3 %v1382_v21  ;;  %v1440_v41 = vld [vmem:[#allocation3 + $0x198] sm:$0xff]  ;;  %2269 = vst [vmem:[#allocation10_spill] sm:$0xff] %v1445_v42  ;;  %v1447_v43 = vld [vmem:[#allocation3 + $0x140] sm:$0xff]  ;;  %v1451_v44 = vld [vmem:[#allocation3 + $0x88] sm:$0xff] }
  0x15   :  { %254 = vmatpush.msrb.mxu1 %v1376_v19  ;;  %200 = vmatpush.msra.mxu2 %v1392_v24  ;;  %2270 = vst [vmem:[#allocation11_spill] sm:$0xff] %v1447_v43  ;;  %v1453_v45 = vld [vmem:[#allocation3 + $0x188] sm:$0xff]  ;;  %v109_v46 = vld [vmem:[%s2195_s0] sm:$0xff]  ;;  %v1462_v47 = vld [vmem:[#allocation3 + $0x30] sm:$0xff] }
  0x16   :  { %235 = vmatpush.msrb.mxu0 %v1386_v22  ;;  %220 = vmatpush.msra.mxu3 %v1394_v25  ;;  %2271 = vst [vmem:[#allocation12_spill] sm:$0xff] %v1462_v47  ;;  %v1464_v48 = vld [vmem:[#allocation3 + $0x130] sm:$0xff]  ;;  %v1468_v49 = vld [vmem:[#allocation3 + $0x78] sm:$0xff]  ;;  %v1474_v51 = vld [vmem:[#allocation3 + $0x20] sm:$0xff] }
  0x17   :  { %255 = vmatpush.msrb.mxu1 %v1388_v23  ;;  %201 = vmatpush.msra.mxu2 %v1404_v28  ;;  %v1432_v38 = vld.sshfl [vmem:[#allocation1] sm:$0xff pattern:$0x73625140]  ;;  %v1434_v39 = vld.sshfl [vmem:[#allocation1 + $0x8] sm:$0xff pattern:$0x73625140] }
  0x18   :  { %236 = vmatpush.msrb.mxu0 %v1398_v26  ;;  %221 = vmatpush.msra.mxu3 %v1406_v29  ;;  %275 = vst [vmem:[#allocation1] ss:$4 sm:$0xff] %v1361_v11  ;;  %v1470_v50 = vld [vmem:[#allocation3 + $0x178] sm:$0xff]  ;;  %v1476_v52 = vld [vmem:[#allocation3 + $0x120] sm:$0xff]  ;;  %v1480_v53 = vld [vmem:[#allocation3 + $0x68] sm:$0xff] }
  0x19   :  { %256 = vmatpush.msrb.mxu1 %v1400_v27  ;;  %202 = vmatpush.msra.mxu2 %v1416_v32  ;;  %2272 = vst [vmem:[#allocation13_spill] sm:$0xff] %v1464_v48  ;;  %v1482_v54 = vld [vmem:[#allocation3 + $0x168] sm:$0xff]  ;;  %v1486_v55 = vld [vmem:[#allocation3 + $0x10] sm:$0xff]  ;;  %v1492_v57 = vld [vmem:[#allocation3 + $0x58] sm:$0xff] }
  0x1a   :  { %237 = vmatpush.msrb.mxu0 %v1410_v30  ;;  %222 = vmatpush.msra.mxu3 %v1418_v33  ;;  %2273 = vst [vmem:[#allocation14_spill] sm:$0xff] %v1474_v51  ;;  %v1488_v56 = vld [vmem:[#allocation3 + $0x110] sm:$0xff]  ;;  %v1494_v58 = vld [vmem:[#allocation3 + $0x158] sm:$0xff]  ;;  %v1498_v59 = vld [vmem:[#allocation3] sm:$0xff] }
  0x1b   :  { %257 = vmatpush.msrb.mxu1 %v1412_v31  ;;  %203 = vmatpush.msra.mxu2 %v1426_v36  ;;  %2274 = vst [vmem:[#allocation15_spill] sm:$0xff] %v1476_v52  ;;  %v1500_v60 = vld [vmem:[#allocation3 + $0x100] sm:$0xff]  ;;  %v1506_v61 = vld [vmem:[#allocation3 + $0x48] sm:$0xff]  ;;  %v1517_v6 = vld [vmem:[#allocation3 + $0x38] sm:$0xff] }
  0x1c   :  { %238 = vmatpush.msrb.mxu0 %v1420_v34  ;;  %223 = vmatpush.msra.mxu3 %v1428_v37  ;;  %2275 = vst [vmem:[#allocation16_spill] sm:$0xff] %v1486_v55  ;;  %v1508_v62 = vld [vmem:[#allocation3 + $0x148] sm:$0xff]  ;;  %v110_v63 = vld [vmem:[%s2195_s0 + $0x8] sm:$0xff]  ;;  %v1519_v16 = vld [vmem:[#allocation3 + $0x138] sm:$0xff] }
  0x1d   :  { %258 = vmatpush.msrb.mxu1 %v1424_v35  ;;  %204 = vmatpush.msra.mxu2 %v1445_v42  ;;  %2276 = vst [vmem:[#allocation17_spill] sm:$0xff] %v1488_v56  ;;  %v1525_v17 = vld [vmem:[#allocation3 + $0x28] sm:$0xff]  ;;  %v1531_v11 = vld [vmem:[#allocation3 + $0x18] sm:$0xff] }
  0x1e   :  { %239 = vmatpush.msrb.mxu0 %v1438_v40  ;;  %224 = vmatpush.msra.mxu3 %v1447_v43  ;;  %2277 = vst [vmem:[#allocation18_spill] sm:$0xff] %v1494_v58 }
  0x1f   :  { %259 = vmatpush.msrb.mxu1 %v1440_v41  ;;  %1139 = vmatmul.msk.f32.vlgmr.msra.gmra.mxu0 %vm122_vm1, %v109_v46  ;;  %2278 = vst [vmem:[#allocation19_spill] sm:$0xff] %v1498_v59 }
  0x20   :  { %240 = vmatpush.msrb.mxu0 %v1451_v44  ;;  %1142 = vmatmul.msk.f32.vlgmr.msra.gmra.mxu1 %vm122_vm1, %v109_v46  ;;  %2279 = vst [vmem:[#allocation20_spill] sm:$0xff] %v1500_v60  ;;  %v1527_v46 = vld [vmem:[#allocation3 + $0x128] sm:$0xff] }
  0x21   :  { %260 = vmatpush.msrb.mxu1 %v1453_v45  ;;  %205 = vmatpush.msra.mxu2 %v1462_v47  ;;  %2280 = vst [vmem:[#allocation21_spill] sm:$0xff] %v1506_v61 }
  0x22   :  { %225 = vmatpush.msra.mxu3 %v1464_v48  ;;  %241 = vmatpush.msrb.mxu0 %v1468_v49  ;;  %2281 = vst [vmem:[#allocation22_spill] sm:$0xff] %v1508_v62 }
  0x23   :  { %261 = vmatpush.msrb.mxu1 %v1470_v50  ;;  %206 = vmatpush.msra.mxu2 %v1474_v51  ;;  %2282 = vst [vmem:[#allocation23_spill] sm:$0xff] %v1517_v6 }
  0x24   :  { %226 = vmatpush.msra.mxu3 %v1476_v52  ;;  %242 = vmatpush.msrb.mxu0 %v1480_v53  ;;  %2283 = vst [vmem:[#allocation24_spill] sm:$0xff] %v1519_v16 }
  0x25   :  { %262 = vmatpush.msrb.mxu1 %v1482_v54  ;;  %207 = vmatpush.msra.mxu2 %v1486_v55  ;;  %2284 = vst [vmem:[#allocation25_spill] sm:$0xff] %v1525_v17 }
  0x26   :  { %227 = vmatpush.msra.mxu3 %v1488_v56  ;;  %243 = vmatpush.msrb.mxu0 %v1492_v57  ;;  %2285 = vst [vmem:[#allocation26_spill] sm:$0xff] %v1527_v46 }
  0x27   :  { %263 = vmatpush.msrb.mxu1 %v1494_v58  ;;  %208 = vmatpush.msra.mxu2 %v1498_v59  ;;  %2286 = vst [vmem:[#allocation27_spill] sm:$0xff] %v1531_v11  ;;  %v1541_v59 = vld [vmem:[#allocation3 + $0x108] sm:$0xff] }
  0x28   :  { %228 = vmatpush.msra.mxu3 %v1500_v60  ;;  %209 = vmatmul.f32.vlgmr.msra.gmra.mxu2 %v1432_v38  ;;  %v1533_v60 = vld [vmem:[#allocation3 + $0x118] sm:$0xff]  ;;  %2289 = vst [vmem:[#allocation30_spill] sm:$0xff] %v1541_v59 }
  0x29   :  { %229 = vmatmul.f32.vlgmr.msra.gmra.mxu3 %v1434_v39  ;;  %244 = vmatpush.msrb.mxu0 %v1506_v61  ;;  %2287 = vst [vmem:[#allocation28_spill] sm:$0xff] %v1533_v60 }
  0x2a   :  { %264 = vmatpush.msrb.mxu1 %v1508_v62  ;;  %1140 = vmatmul.msk.f32.gmra.mxu0 %vm122_vm1, %v110_v63 }
  0x2b   :  { %1143 = vmatmul.msk.f32.gmra.mxu1 %vm122_vm1, %v110_v63  ;;  %245 = vmatpush.msrb.mxu0 %v1517_v6  ;;  %v1539_v63 = vld [vmem:[#allocation3 + $0x8] sm:$0xff] }
  0x2c   :  { %265 = vmatpush.msrb.mxu1 %v1519_v16  ;;  %299 = vmatpush.msrb.mxu2 %v1327_v0  ;;  %2288 = vst [vmem:[#allocation29_spill] sm:$0xff] %v1539_v63 }
  0x2d   :  { %319 = vmatpush.msrb.mxu3 %v1329_v1  ;;  %246 = vmatpush.msrb.mxu0 %v1525_v17 }
  0x2e   :  { %266 = vmatpush.msrb.mxu1 %v1527_v46  ;;  %300 = vmatpush.msrb.mxu2 %v1331_v2 }
  0x2f   :  { %320 = vmatpush.msrb.mxu3 %v1335_v3  ;;  %247 = vmatpush.msrb.mxu0 %v1531_v11 }
  0x30   :  { %267 = vmatpush.msrb.mxu1 %v1533_v60  ;;  %301 = vmatpush.msrb.mxu2 %v1337_v4 }
  0x31   :  { %321 = vmatpush.msrb.mxu3 %v1339_v5  ;;  %248 = vmatpush.msrb.mxu0 %v1539_v63 }
  0x32   :  { %268 = vmatpush.msrb.mxu1 %v1541_v59  ;;  %249 = vmatmul.f32.vlgmr.msrb.gmra.mxu0 %v1432_v38  ;;  %v2290_v38 = vld [vmem:[#allocation19_spill] sm:$0xff] }
  0x33   :  { %269 = vmatmul.f32.vlgmr.msrb.gmra.mxu1 %v1434_v39  ;;  %339 = vmatpush.msra.mxu0 %v1363_v12  ;;  %v2291_v39 = vld [vmem:[#allocation20_spill] sm:$0xff] }
  0x34   :  { %359 = vmatpush.msra.mxu1 %v1367_v13  ;;  %302 = vmatpush.msrb.mxu2 %v1346_v7 }
  0x35   :  { %322 = vmatpush.msrb.mxu3 %v1348_v8  ;;  %340 = vmatpush.msra.mxu0 %v1374_v18 }
  0x36   :  { %360 = vmatpush.msra.mxu1 %v1376_v19  ;;  %303 = vmatpush.msrb.mxu2 %v1352_v9 }
  0x37   :  { %323 = vmatpush.msrb.mxu3 %v1354_v10  ;;  %341 = vmatpush.msra.mxu0 %v1386_v22 }
  0x38   :  { %361 = vmatpush.msra.mxu1 %v1388_v23  ;;  %304 = vmatpush.msrb.mxu2 %v1369_v14 }
  0x39   :  { %324 = vmatpush.msrb.mxu3 %v1371_v15  ;;  %342 = vmatpush.msra.mxu0 %v1398_v26 }
  0x3a   :  { %362 = vmatpush.msra.mxu1 %v1400_v27  ;;  %305 = vmatpush.msrb.mxu2 %v1380_v20 }
  0x3b   :  { %325 = vmatpush.msrb.mxu3 %v1382_v21  ;;  %343 = vmatpush.msra.mxu0 %v1410_v30 }
  0x3c   :  { %363 = vmatpush.msra.mxu1 %v1412_v31  ;;  %306 = vmatpush.msrb.mxu2 %v1392_v24 }
  0x3d   :  { %326 = vmatpush.msrb.mxu3 %v1394_v25  ;;  %344 = vmatpush.msra.mxu0 %v1420_v34 }
  0x3e   :  { %364 = vmatpush.msra.mxu1 %v1424_v35  ;;  %307 = vmatpush.msrb.mxu2 %v1404_v28 }
  0x3f   :  { %327 = vmatpush.msrb.mxu3 %v1406_v29  ;;  %345 = vmatpush.msra.mxu0 %v1438_v40 }
  0x40   :  { %365 = vmatpush.msra.mxu1 %v1440_v41  ;;  %308 = vmatpush.msrb.mxu2 %v1416_v32 }
  0x41   :  { %328 = vmatpush.msrb.mxu3 %v1418_v33  ;;  %346 = vmatpush.msra.mxu0 %v1451_v44 }
  0x42   :  { %366 = vmatpush.msra.mxu1 %v1453_v45  ;;  %309 = vmatpush.msrb.mxu2 %v1426_v36 }
  0x43   :  { %329 = vmatpush.msrb.mxu3 %v1428_v37  ;;  %347 = vmatpush.msra.mxu0 %v1468_v49 }
  0x44   :  { %367 = vmatpush.msra.mxu1 %v1470_v50  ;;  %310 = vmatpush.msrb.mxu2 %v1445_v42 }
  0x45   :  { %330 = vmatpush.msrb.mxu3 %v1447_v43  ;;  %348 = vmatpush.msra.mxu0 %v1480_v53 }
  0x46   :  { %368 = vmatpush.msra.mxu1 %v1482_v54  ;;  %311 = vmatpush.msrb.mxu2 %v1462_v47 }
  0x47   :  { %331 = vmatpush.msrb.mxu3 %v1464_v48  ;;  %349 = vmatpush.msra.mxu0 %v1492_v57 }
  0x48   :  { %369 = vmatpush.msra.mxu1 %v1494_v58  ;;  %312 = vmatpush.msrb.mxu2 %v1474_v51 }
  0x49   :  { %332 = vmatpush.msrb.mxu3 %v1476_v52  ;;  %350 = vmatpush.msra.mxu0 %v1506_v61 }
  0x4a   :  { %370 = vmatpush.msra.mxu1 %v1508_v62  ;;  %313 = vmatpush.msrb.mxu2 %v1486_v55 }
  0x4b   :  { %333 = vmatpush.msrb.mxu3 %v1488_v56  ;;  %351 = vmatpush.msra.mxu0 %v1517_v6 }
  0x4c   :  { %371 = vmatpush.msra.mxu1 %v1519_v16  ;;  %314 = vmatpush.msrb.mxu2 %v2290_v38 }
  0x4d   :  { %334 = vmatpush.msrb.mxu3 %v2291_v39  ;;  %352 = vmatpush.msra.mxu0 %v1525_v17 }
  0x4e   :  { %372 = vmatpush.msra.mxu1 %v1527_v46  ;;  %412 = vmatpush.msra.mxu2 %v1327_v0 }
  0x4f   :  { %432 = vmatpush.msra.mxu3 %v1329_v1  ;;  %353 = vmatpush.msra.mxu0 %v1531_v11 }
  0x50   :  { %373 = vmatpush.msra.mxu1 %v1533_v60  ;;  %413 = vmatpush.msra.mxu2 %v1331_v2 }
  0x51   :  { %433 = vmatpush.msra.mxu3 %v1335_v3  ;;  %354 = vmatpush.msra.mxu0 %v1539_v63 }
  0x52   :  { %374 = vmatpush.msra.mxu1 %v1541_v59  ;;  %414 = vmatpush.msra.mxu2 %v1337_v4 }
  0x53   :  { %452 = vmatpush.msrb.mxu0 %v1363_v12  ;;  %434 = vmatpush.msra.mxu3 %v1339_v5 }
  0x54   :  { %472 = vmatpush.msrb.mxu1 %v1367_v13  ;;  %415 = vmatpush.msra.mxu2 %v1346_v7 }
  0x55   :  { %453 = vmatpush.msrb.mxu0 %v1374_v18  ;;  %435 = vmatpush.msra.mxu3 %v1348_v8 }
  0x56   :  { %473 = vmatpush.msrb.mxu1 %v1376_v19  ;;  %416 = vmatpush.msra.mxu2 %v1352_v9 }
  0x57   :  { %454 = vmatpush.msrb.mxu0 %v1386_v22  ;;  %436 = vmatpush.msra.mxu3 %v1354_v10 }
  0x58   :  { %474 = vmatpush.msrb.mxu1 %v1388_v23  ;;  %417 = vmatpush.msra.mxu2 %v1369_v14 }
  0x59   :  { %455 = vmatpush.msrb.mxu0 %v1398_v26  ;;  %437 = vmatpush.msra.mxu3 %v1371_v15 }
  0x5a   :  { %475 = vmatpush.msrb.mxu1 %v1400_v27  ;;  %418 = vmatpush.msra.mxu2 %v1380_v20 }
  0x5b   :  { %456 = vmatpush.msrb.mxu0 %v1410_v30  ;;  %438 = vmatpush.msra.mxu3 %v1382_v21 }
  0x5c   :  { %476 = vmatpush.msrb.mxu1 %v1412_v31  ;;  %419 = vmatpush.msra.mxu2 %v1392_v24 }
  0x5d   :  { %457 = vmatpush.msrb.mxu0 %v1420_v34  ;;  %439 = vmatpush.msra.mxu3 %v1394_v25 }
  0x5e   :  { %477 = vmatpush.msrb.mxu1 %v1424_v35  ;;  %420 = vmatpush.msra.mxu2 %v1404_v28 }
  0x5f   :  { %458 = vmatpush.msrb.mxu0 %v1438_v40  ;;  %440 = vmatpush.msra.mxu3 %v1406_v29 }
  0x60   :  { %478 = vmatpush.msrb.mxu1 %v1440_v41  ;;  %421 = vmatpush.msra.mxu2 %v1416_v32 }
  0x61   :  { %459 = vmatpush.msrb.mxu0 %v1451_v44  ;;  %441 = vmatpush.msra.mxu3 %v1418_v33 }
  0x62   :  { %479 = vmatpush.msrb.mxu1 %v1453_v45  ;;  %422 = vmatpush.msra.mxu2 %v1426_v36 }
  0x63   :  { %460 = vmatpush.msrb.mxu0 %v1468_v49  ;;  %442 = vmatpush.msra.mxu3 %v1428_v37 }
  0x64   :  { %480 = vmatpush.msrb.mxu1 %v1470_v50  ;;  %423 = vmatpush.msra.mxu2 %v1445_v42 }
  0x65   :  { %461 = vmatpush.msrb.mxu0 %v1480_v53  ;;  %443 = vmatpush.msra.mxu3 %v1447_v43 }
  0x66   :  { %481 = vmatpush.msrb.mxu1 %v1482_v54  ;;  %424 = vmatpush.msra.mxu2 %v1462_v47 }
  0x67   :  { %462 = vmatpush.msrb.mxu0 %v1492_v57  ;;  %444 = vmatpush.msra.mxu3 %v1464_v48 }
  0x68   :  { %482 = vmatpush.msrb.mxu1 %v1494_v58  ;;  %425 = vmatpush.msra.mxu2 %v1474_v51 }
  0x69   :  { %463 = vmatpush.msrb.mxu0 %v1506_v61  ;;  %445 = vmatpush.msra.mxu3 %v1476_v52 }
  0x6a   :  { %483 = vmatpush.msrb.mxu1 %v1508_v62  ;;  %426 = vmatpush.msra.mxu2 %v1486_v55  ;;  %v276_v62 = vld.sshfl [vmem:[#allocation1 + $0x8] sm:$0xff pattern:$0x73625140] }
  0x6b   :  { %464 = vmatpush.msrb.mxu0 %v1517_v6  ;;  %446 = vmatpush.msra.mxu3 %v1488_v56  ;;  %v112_v56 = vld [vmem:[%s2199_s4] sm:$0x3] }
  0x6c   :  { %484 = vmatpush.msrb.mxu1 %v1519_v16  ;;  %427 = vmatpush.msra.mxu2 %v2290_v38  ;;  %v114_v55 = vperm.slane %v112_v56, 0 }
  0x6d   :  { %465 = vmatpush.msrb.mxu0 %v1525_v17  ;;  %447 = vmatpush.msra.mxu3 %v2291_v39  ;;  %v115_v17 = vperm.slane %v112_v56, 1 }
  0x6e   :  { %485 = vmatpush.msrb.mxu1 %v1527_v46 }
  0x6f   :  { %466 = vmatpush.msrb.mxu0 %v1531_v11 }
  0x70   :  { %486 = vmatpush.msrb.mxu1 %v1533_v60 }
  0x71   :  { %467 = vmatpush.msrb.mxu0 %v1539_v63 }
  0x72   :  { %487 = vmatpush.msrb.mxu1 %v1541_v59 }
  0x9c   :  { %v151_v52 = vpop.f32.mrf.mxu0 }
  0x9d   :  { %v174_v46 = vpop.f32.mrf.mxu1  ;;  %v152_v51 = vadd.f32 %v151_v52, %v114_v55 }
  0x9e   :  { %v175_v38 = vadd.f32 %v174_v46, %v115_v17 }
  0x9f   :  { %180 = vst [vmem:[#allocation2 + $0x10] sm:$0xff] %v152_v51 }
  0xa0   :  { %181 = vst [vmem:[#allocation2] sm:$0xff] %v175_v38  ;;  %v2292_v38 = vld [vmem:[#allocation9_spill] sm:$0xff] }
  0xa1   :  { %v281_v58 = vmul.f32 0.0, %v2292_v38  ;;  %v2307_v38 = vld [vmem:[#allocation17_spill] sm:$0xff] }
  0xa6   :  { %v185_v48 = vld [vmem:[#allocation2 + $0x10] sm:$0x3] }
  0xa7   :  { %v154_v39 = vpop.f32.mrf.mxu0  ;;  %v186_v42 = vld [vmem:[#allocation2] sm:$0x3] }
  0xa8   :  { %v177_v11 = vpop.f32.mrf.mxu1  ;;  %v155_v16 = vadd.f32 %v154_v39, %v114_v55  ;;  %v2302_v39 = vld [vmem:[#allocation14_spill] sm:$0xff] }
  0xa9   :  { %v178_v60 = vadd.f32 %v177_v11, %v115_v17  ;;  %v2300_v17 = vld [vmem:[#allocation23_spill] sm:$0xff] }
  0xaa   :  { %182 = vst [vmem:[#allocation2 + $0x18] sm:$0xff] %v155_v16 }
  0xab   :  { %183 = vst [vmem:[#allocation2 + $0x8] sm:$0xff] %v178_v60  ;;  %v210_v63 = vpop.f32.mrf.mxu2 }
  0xac   :  { %v230_v59 = vpop.f32.mrf.mxu3 }
  0xad   :  { %v231_v6 = vadd.f32 %v230_v59, %v210_v63  ;;  %v2301_v63 = vld [vmem:[#allocation24_spill] sm:$0xff] }
  0xaf   :  { %v273_v47 = vadd.f32 %v231_v6, %v185_v48  ;;  %v250_v61 = vpop.f32.mrf.mxu0  ;;  %v2299_v6 = vld [vmem:[#allocation13_spill] sm:$0xff] }
  0xb0   :  { %v270_v56 = vpop.f32.mrf.mxu1 }
  0xb1   :  { %v271_v43 = vadd.f32 %v270_v56, %v250_v61  ;;  %v278_v52 = vadd.f32 %v276_v62, %v273_v47  ;;  %v2295_v47 = vld [vmem:[#allocation11_spill] sm:$0xff]  ;;  %v2297_v61 = vld [vmem:[#allocation22_spill] sm:$0xff]  ;;  %v2298_v62 = vld [vmem:[#allocation12_spill] sm:$0xff] }
  0xb2   :  { %v2303_v56 = vld [vmem:[#allocation15_spill] sm:$0xff] }
  0xb3   :  { %v274_v46 = vadd.f32 %v271_v43, %v186_v42  ;;  %v279_v55 = vmax.f32 %v278_v52, 0.0  ;;  %v2293_v42 = vld [vmem:[#allocation18_spill] sm:$0xff]  ;;  %v2304_v52 = vld [vmem:[#allocation25_spill] sm:$0xff] }
  0xb4   :  { %v2294_v43 = vld [vmem:[#allocation10_spill] sm:$0xff] }
  0xb5   :  { %v280_v51 = vmax.f32 %v274_v46, 0.0  ;;  %v2305_v46 = vld [vmem:[#allocation26_spill] sm:$0xff] }
  0xb7   :  { %v284_v11 = vrot.slane %v280_v51, 6  ;;  %v2306_v51 = vld [vmem:[#allocation16_spill] sm:$0xff] }
  0xb9   :  { %v286_v60 = vsel %vm285_vm2, %v279_v55, %v284_v11  ;;  %v2308_v55 = vld [vmem:[#allocation27_spill] sm:$0xff]  ;;  %v2309_v11 = vld [vmem:[#allocation28_spill] sm:$0xff] }
  0xba   :  { %v1680_v16 = vadd.f32 %v286_v60, %v281_v58  ;;  %v2296_v58 = vld [vmem:[#allocation21_spill] sm:$0xff]  ;;  %v2310_v60 = vld [vmem:[#allocation19_spill] sm:$0xff] }
  0xbc   :  { %290 = vst.msk [vmem:[#allocation6] sm:$0x3] %vm289_vm3, %v1680_v16 }
  0xbd   :  { %294 = vst [vmem:[#allocation1] ss:$4 sm:$0xff] %v1680_v16 }
  0xc4   :  { %v295_v48 = vld.sshfl [vmem:[#allocation1] sm:$0xff pattern:$0x73625140]  ;;  %v296_v59 = vld.sshfl [vmem:[#allocation1 + $0x8] sm:$0xff pattern:$0x73625140] }
  0xc5   :  { %315 = vmatmul.f32.vlgmr.msrb.gmra.mxu2 %v295_v48  ;;  %335 = vmatmul.f32.vlgmr.msrb.gmra.mxu3 %v296_v59  ;;  %388 = vst [vmem:[#allocation1 + $0x1] ss:$4 sm:$0xff] %v1680_v16 }
  0xc6   :  { %355 = vmatmul.f32.vlgmr.msra.gmra.mxu0 %v295_v48  ;;  %375 = vmatmul.f32.vlgmr.msra.gmra.mxu1 %v296_v59  ;;  %v2311_v48 = vld [vmem:[#allocation20_spill] sm:$0xff]  ;;  %v2312_v59 = vld [vmem:[#allocation29_spill] sm:$0xff] }
  0xc7   :  { %525 = vmatpush.msrb.mxu2 %v1327_v0  ;;  %545 = vmatpush.msrb.mxu3 %v1329_v1 }
  0xc8   :  { %565 = vmatpush.msra.mxu0 %v1363_v12  ;;  %585 = vmatpush.msra.mxu1 %v1367_v13 }
  0xc9   :  { %526 = vmatpush.msrb.mxu2 %v1331_v2  ;;  %546 = vmatpush.msrb.mxu3 %v1335_v3 }
  0xca   :  { %566 = vmatpush.msra.mxu0 %v1374_v18  ;;  %586 = vmatpush.msra.mxu1 %v1376_v19 }
  0xcb   :  { %527 = vmatpush.msrb.mxu2 %v1337_v4  ;;  %547 = vmatpush.msrb.mxu3 %v1339_v5 }
  0xcc   :  { %567 = vmatpush.msra.mxu0 %v1386_v22  ;;  %587 = vmatpush.msra.mxu1 %v1388_v23 }
  0xcd   :  { %528 = vmatpush.msrb.mxu2 %v1346_v7  ;;  %548 = vmatpush.msrb.mxu3 %v1348_v8 }
  0xce   :  { %568 = vmatpush.msra.mxu0 %v1398_v26  ;;  %588 = vmatpush.msra.mxu1 %v1400_v27 }
  0xcf   :  { %529 = vmatpush.msrb.mxu2 %v1352_v9  ;;  %549 = vmatpush.msrb.mxu3 %v1354_v10 }
  0xd0   :  { %569 = vmatpush.msra.mxu0 %v1410_v30  ;;  %589 = vmatpush.msra.mxu1 %v1412_v31 }
  0xd1   :  { %530 = vmatpush.msrb.mxu2 %v1369_v14  ;;  %550 = vmatpush.msrb.mxu3 %v1371_v15 }
  0xd2   :  { %570 = vmatpush.msra.mxu0 %v1420_v34  ;;  %590 = vmatpush.msra.mxu1 %v1424_v35 }
  0xd3   :  { %531 = vmatpush.msrb.mxu2 %v1380_v20  ;;  %551 = vmatpush.msrb.mxu3 %v1382_v21 }
  0xd4   :  { %571 = vmatpush.msra.mxu0 %v1438_v40  ;;  %591 = vmatpush.msra.mxu1 %v1440_v41 }
  0xd5   :  { %532 = vmatpush.msrb.mxu2 %v1392_v24  ;;  %552 = vmatpush.msrb.mxu3 %v1394_v25 }
  0xd6   :  { %572 = vmatpush.msra.mxu0 %v1451_v44  ;;  %592 = vmatpush.msra.mxu1 %v1453_v45 }
  0xd7   :  { %533 = vmatpush.msrb.mxu2 %v1404_v28  ;;  %553 = vmatpush.msrb.mxu3 %v1406_v29 }
  0xd8   :  { %573 = vmatpush.msra.mxu0 %v1468_v49  ;;  %593 = vmatpush.msra.mxu1 %v1470_v50 }
  0xd9   :  { %534 = vmatpush.msrb.mxu2 %v1416_v32  ;;  %554 = vmatpush.msrb.mxu3 %v1418_v33 }
  0xda   :  { %574 = vmatpush.msra.mxu0 %v1480_v53  ;;  %594 = vmatpush.msra.mxu1 %v1482_v54 }
  0xdb   :  { %535 = vmatpush.msrb.mxu2 %v1426_v36  ;;  %555 = vmatpush.msrb.mxu3 %v1428_v37 }
  0xdc   :  { %575 = vmatpush.msra.mxu0 %v1492_v57  ;;  %595 = vmatpush.msra.mxu1 %v2293_v42 }
  0xdd   :  { %536 = vmatpush.msrb.mxu2 %v2294_v43  ;;  %556 = vmatpush.msrb.mxu3 %v2295_v47 }
  0xde   :  { %576 = vmatpush.msra.mxu0 %v2296_v58  ;;  %596 = vmatpush.msra.mxu1 %v2297_v61  ;;  %v291_v58 = vld [vmem:[#allocation2 + $0x10] sm:$0xc] }
  0xdf   :  { %537 = vmatpush.msrb.mxu2 %v2298_v62  ;;  %557 = vmatpush.msrb.mxu3 %v2299_v6 }
  0xe0   :  { %577 = vmatpush.msra.mxu0 %v2300_v17  ;;  %597 = vmatpush.msra.mxu1 %v2301_v63  ;;  %v292_v17 = vld [vmem:[#allocation2] sm:$0xc] }
  0xe1   :  { %538 = vmatpush.msrb.mxu2 %v2302_v39  ;;  %558 = vmatpush.msrb.mxu3 %v2303_v56  ;;  %v2313_v39 = vld [vmem:[#allocation30_spill] sm:$0xff] }
  0xe2   :  { %578 = vmatpush.msra.mxu0 %v2304_v52  ;;  %598 = vmatpush.msra.mxu1 %v2305_v46 }
  0xe3   :  { %539 = vmatpush.msrb.mxu2 %v2306_v51  ;;  %559 = vmatpush.msrb.mxu3 %v2307_v38 }
  0xe4   :  { %579 = vmatpush.msra.mxu0 %v2308_v55  ;;  %599 = vmatpush.msra.mxu1 %v2309_v11  ;;  %v389_v11 = vld.sshfl [vmem:[#allocation1 + $0x8] sm:$0xff pattern:$0x73625140] }
  0xe5   :  { %540 = vmatpush.msrb.mxu2 %v2310_v60  ;;  %560 = vmatpush.msrb.mxu3 %v2311_v48 }
  0xe6   :  { %580 = vmatpush.msra.mxu0 %v2312_v59  ;;  %600 = vmatpush.msra.mxu1 %v2313_v39  ;;  %v394_v39 = vmul.f32 0.0, %v1680_v16  ;;  %v2324_v16 = vld [vmem:[#allocation25_spill] sm:$0xff] }
 0x143   :  { %v356_v56 = vpop.f32.mrf.mxu0  ;;  %v376_v52 = vpop.f32.mrf.mxu1 }
 0x144   :  { %v377_v63 = vadd.f32 %v376_v52, %v356_v56  ;;  %v2331_v56 = vld [vmem:[#allocation20_spill] sm:$0xff]  ;;  %v2332_v52 = vld [vmem:[#allocation29_spill] sm:$0xff] }
 0x146   :  { %v382_v46 = vrot.slane %v377_v63, 6  ;;  %v2329_v63 = vld [vmem:[#allocation28_spill] sm:$0xff] }
 0x148   :  { %v386_v51 = vadd.f32 %v382_v46, %v292_v17  ;;  %v316_v6 = vpop.f32.mrf.mxu2  ;;  %v336_v38 = vpop.f32.mrf.mxu3  ;;  %v2333_v46 = vld [vmem:[#allocation30_spill] sm:$0xff] }
 0x149   :  { %v337_v62 = vadd.f32 %v336_v38, %v316_v6 }
 0x14a   :  { %v393_v55 = vmax.f32 %v386_v51, 0.0 }
 0x14b   :  { %v381_v61 = vrot.slane %v337_v62, 6  ;;  %v2328_v62 = vld [vmem:[#allocation27_spill] sm:$0xff] }
 0x14c   :  { %398 = vst.sshfl [vmem:[#allocation1 + $0x8] sm:$0xff pattern:$0x73625140] %v393_v55 }
 0x14d   :  { %v385_v60 = vadd.f32 %v381_v61, %v291_v58  ;;  %v2326_v58 = vld [vmem:[#allocation16_spill] sm:$0xff]  ;;  %v2327_v61 = vld [vmem:[#allocation17_spill] sm:$0xff] }
 0x14f   :  { %v391_v48 = vadd.f32 %v389_v11, %v385_v60  ;;  %v405_v60 = vld [vmem:[#allocation2] sm:$0x30] }
 0x151   :  { %v392_v47 = vmax.f32 %v391_v48, 0.0 }
 0x153   :  { %397 = vst.sshfl [vmem:[#allocation1] sm:$0xff pattern:$0x73625140] %v392_v47  ;;  %v2325_v47 = vld [vmem:[#allocation26_spill] sm:$0xff] }
 0x15a   :  { %v400_v59 = vld [vmem:[#allocation1 + $0x1] ss:$4 sm:$0xff] }
 0x15b   :  { %v1751_v43 = vadd.f32 %v400_v59, %v394_v39  ;;  %v2330_v39 = vld [vmem:[#allocation19_spill] sm:$0xff] }
 0x15d   :  { %407 = vst [vmem:[#allocation1] ss:$4 sm:$0xff] %v1751_v43 }
 0x15e   :  { %403 = vst.msk [vmem:[#allocation6 + $0x2] sm:$0x3] %vm289_vm3, %v1751_v43 }
 0x164   :  { %v408_v6 = vld.sshfl [vmem:[#allocation1] sm:$0xff pattern:$0x73625140]  ;;  %v409_v17 = vld.sshfl [vmem:[#allocation1 + $0x8] sm:$0xff pattern:$0x73625140] }
 0x165   :  { %428 = vmatmul.f32.vlgmr.msra.gmra.mxu2 %v408_v6  ;;  %448 = vmatmul.f32.vlgmr.msra.gmra.mxu3 %v409_v17  ;;  %501 = vst [vmem:[#allocation1 + $0x2] ss:$4 sm:$0xff] %v1751_v43 }
 0x166   :  { %468 = vmatmul.f32.vlgmr.msrb.gmra.mxu0 %v408_v6  ;;  %488 = vmatmul.f32.vlgmr.msrb.gmra.mxu1 %v409_v17 }
 0x167   :  { %638 = vmatpush.msra.mxu2 %v1327_v0  ;;  %658 = vmatpush.msra.mxu3 %v1329_v1  ;;  %v2314_v0 = vld [vmem:[#allocation10_spill] sm:$0xff]  ;;  %v2315_v1 = vld [vmem:[#allocation11_spill] sm:$0xff] }
 0x168   :  { %678 = vmatpush.msrb.mxu0 %v1363_v12  ;;  %698 = vmatpush.msrb.mxu1 %v1367_v13 }
 0x169   :  { %639 = vmatpush.msra.mxu2 %v1331_v2  ;;  %659 = vmatpush.msra.mxu3 %v1335_v3  ;;  %v2316_v2 = vld [vmem:[#allocation21_spill] sm:$0xff]  ;;  %v2317_v3 = vld [vmem:[#allocation22_spill] sm:$0xff] }
 0x16a   :  { %679 = vmatpush.msrb.mxu0 %v1374_v18  ;;  %699 = vmatpush.msrb.mxu1 %v1376_v19 }
 0x16b   :  { %640 = vmatpush.msra.mxu2 %v1337_v4  ;;  %660 = vmatpush.msra.mxu3 %v1339_v5  ;;  %v2318_v4 = vld [vmem:[#allocation12_spill] sm:$0xff]  ;;  %v2319_v5 = vld [vmem:[#allocation13_spill] sm:$0xff] }
 0x16c   :  { %680 = vmatpush.msrb.mxu0 %v1386_v22  ;;  %700 = vmatpush.msrb.mxu1 %v1388_v23 }
 0x16d   :  { %641 = vmatpush.msra.mxu2 %v1346_v7  ;;  %661 = vmatpush.msra.mxu3 %v1348_v8  ;;  %v2320_v7 = vld [vmem:[#allocation23_spill] sm:$0xff]  ;;  %v2321_v8 = vld [vmem:[#allocation24_spill] sm:$0xff] }
 0x16e   :  { %681 = vmatpush.msrb.mxu0 %v1398_v26  ;;  %701 = vmatpush.msrb.mxu1 %v1400_v27 }
 0x16f   :  { %642 = vmatpush.msra.mxu2 %v1352_v9  ;;  %662 = vmatpush.msra.mxu3 %v1354_v10  ;;  %v2322_v9 = vld [vmem:[#allocation14_spill] sm:$0xff]  ;;  %v2323_v10 = vld [vmem:[#allocation15_spill] sm:$0xff] }
 0x170   :  { %682 = vmatpush.msrb.mxu0 %v1410_v30  ;;  %702 = vmatpush.msrb.mxu1 %v1412_v31 }
 0x171   :  { %643 = vmatpush.msra.mxu2 %v1369_v14  ;;  %663 = vmatpush.msra.mxu3 %v1371_v15 }
 0x172   :  { %683 = vmatpush.msrb.mxu0 %v1420_v34  ;;  %703 = vmatpush.msrb.mxu1 %v1424_v35 }
 0x173   :  { %644 = vmatpush.msra.mxu2 %v1380_v20  ;;  %664 = vmatpush.msra.mxu3 %v1382_v21 }
 0x174   :  { %684 = vmatpush.msrb.mxu0 %v1438_v40  ;;  %704 = vmatpush.msrb.mxu1 %v1440_v41 }
 0x175   :  { %645 = vmatpush.msra.mxu2 %v1392_v24  ;;  %665 = vmatpush.msra.mxu3 %v1394_v25 }
 0x176   :  { %685 = vmatpush.msrb.mxu0 %v1451_v44  ;;  %705 = vmatpush.msrb.mxu1 %v1453_v45 }
 0x177   :  { %646 = vmatpush.msra.mxu2 %v1404_v28  ;;  %666 = vmatpush.msra.mxu3 %v1406_v29 }
 0x178   :  { %686 = vmatpush.msrb.mxu0 %v1468_v49  ;;  %706 = vmatpush.msrb.mxu1 %v1470_v50 }
 0x179   :  { %647 = vmatpush.msra.mxu2 %v1416_v32  ;;  %667 = vmatpush.msra.mxu3 %v1418_v33 }
 0x17a   :  { %687 = vmatpush.msrb.mxu0 %v1480_v53  ;;  %707 = vmatpush.msrb.mxu1 %v1482_v54 }
 0x17b   :  { %648 = vmatpush.msra.mxu2 %v1426_v36  ;;  %668 = vmatpush.msra.mxu3 %v1428_v37 }
 0x17c   :  { %688 = vmatpush.msrb.mxu0 %v1492_v57  ;;  %708 = vmatpush.msrb.mxu1 %v2293_v42 }
 0x17d   :  { %649 = vmatpush.msra.mxu2 %v2314_v0  ;;  %669 = vmatpush.msra.mxu3 %v2315_v1 }
 0x17e   :  { %689 = vmatpush.msrb.mxu0 %v2316_v2  ;;  %709 = vmatpush.msrb.mxu1 %v2317_v3 }
 0x17f   :  { %650 = vmatpush.msra.mxu2 %v2318_v4  ;;  %670 = vmatpush.msra.mxu3 %v2319_v5 }
 0x180   :  { %690 = vmatpush.msrb.mxu0 %v2320_v7  ;;  %710 = vmatpush.msrb.mxu1 %v2321_v8 }
 0x181   :  { %651 = vmatpush.msra.mxu2 %v2322_v9  ;;  %671 = vmatpush.msra.mxu3 %v2323_v10 }
 0x182   :  { %691 = vmatpush.msrb.mxu0 %v2324_v16  ;;  %711 = vmatpush.msrb.mxu1 %v2325_v47 }
 0x183   :  { %652 = vmatpush.msra.mxu2 %v2326_v58  ;;  %672 = vmatpush.msra.mxu3 %v2327_v61  ;;  %v404_v58 = vld [vmem:[#allocation2 + $0x10] sm:$0x30] }
 0x184   :  { %692 = vmatpush.msrb.mxu0 %v2328_v62  ;;  %712 = vmatpush.msrb.mxu1 %v2329_v63  ;;  %v502_v63 = vld.sshfl [vmem:[#allocation1 + $0x8] sm:$0xff pattern:$0x73625140] }
 0x185   :  { %653 = vmatpush.msra.mxu2 %v2330_v39  ;;  %673 = vmatpush.msra.mxu3 %v2331_v56 }
 0x186   :  { %693 = vmatpush.msrb.mxu0 %v2332_v52  ;;  %713 = vmatpush.msrb.mxu1 %v2333_v46  ;;  %v507_v46 = vmul.f32 0.0, %v1751_v43  ;;  %v1831_v43 = vld [vmem:[#allocation3 + $0x1f0] sm:$0xff] }
 0x1e3   :  { %v469_v51 = vpop.f32.mrf.mxu0  ;;  %v489_v38 = vpop.f32.mrf.mxu1 }
 0x1e4   :  { %v490_v55 = vadd.f32 %v489_v38, %v469_v51 }
 0x1e6   :  { %v495_v11 = vrot.slane %v490_v55, 4  ;;  %v1971_v55 = vld [vmem:[#allocation3 + $0x90] sm:$0xff] }
 0x1e8   :  { %v499_v48 = vadd.f32 %v495_v11, %v405_v60  ;;  %v429_v59 = vpop.f32.mrf.mxu2  ;;  %v449_v6 = vpop.f32.mrf.mxu3  ;;  %v1974_v11 = vld [vmem:[#allocation3 + $0x190] sm:$0xff]  ;;  %v1977_v60 = vld [vmem:[#allocation3 + $0x98] sm:$0xff] }
 0x1e9   :  { %v450_v17 = vadd.f32 %v449_v6, %v429_v59  ;;  %v1983_v59 = vld [vmem:[#allocation3 + $0x80] sm:$0xff] }
 0x1ea   :  { %v506_v62 = vmax.f32 %v499_v48, 0.0  ;;  %v1980_v48 = vld [vmem:[#allocation3 + $0x198] sm:$0xff]  ;;  %v1986_v6 = vld [vmem:[#allocation3 + $0x180] sm:$0xff] }
 0x1eb   :  { %v494_v61 = vrot.slane %v450_v17, 4  ;;  %v1989_v17 = vld [vmem:[#allocation3 + $0x88] sm:$0xff] }
 0x1ec   :  { %511 = vst.sshfl [vmem:[#allocation1 + $0x8] sm:$0xff pattern:$0x73625140] %v506_v62  ;;  %v1844_v62 = vld [vmem:[#allocation3 + $0xd0] sm:$0xff] }
 0x1ed   :  { %v498_v39 = vadd.f32 %v494_v61, %v404_v58  ;;  %v1828_v58 = vld [vmem:[#allocation3 + $0xf0] sm:$0xff]  ;;  %v1839_v61 = vld [vmem:[#allocation3 + $0x1e0] sm:$0xff] }
 0x1ef   :  { %v504_v56 = vadd.f32 %v502_v63, %v498_v39  ;;  %v1847_v63 = vld [vmem:[#allocation3 + $0x1d0] sm:$0xff]  ;;  %v1959_v39 = vld [vmem:[#allocation3 + $0xa0] sm:$0xff] }
 0x1f1   :  { %v505_v47 = vmax.f32 %v504_v56, 0.0  ;;  %v1962_v56 = vld [vmem:[#allocation3 + $0x1a0] sm:$0xff] }
 0x1f3   :  { %510 = vst.sshfl [vmem:[#allocation1] sm:$0xff pattern:$0x73625140] %v505_v47  ;;  %v1836_v47 = vld [vmem:[#allocation3 + $0xe0] sm:$0xff] }
 0x1fa   :  { %v513_v52 = vld [vmem:[#allocation1 + $0x2] ss:$4 sm:$0xff] }
 0x1fb   :  { %v1822_v16 = vadd.f32 %v513_v52, %v507_v46  ;;  %v1965_v52 = vld [vmem:[#allocation3 + $0xa8] sm:$0xff] }
 0x1fc   :  { %v1968_v46 = vld [vmem:[#allocation3 + $0x1a8] sm:$0xff] }
 0x1fd   :  { %520 = vst [vmem:[#allocation1] ss:$4 sm:$0xff] %v1822_v16 }
 0x1fe   :  { %516 = vst.msk [vmem:[#allocation6 + $0x4] sm:$0x3] %vm289_vm3, %v1822_v16 }
 0x204   :  { %v521_v51 = vld.sshfl [vmem:[#allocation1] sm:$0xff pattern:$0x73625140]  ;;  %v522_v38 = vld.sshfl [vmem:[#allocation1 + $0x8] sm:$0xff pattern:$0x73625140] }
 0x205   :  { %541 = vmatmul.f32.vlgmr.msrb.gmra.mxu2 %v521_v51  ;;  %561 = vmatmul.f32.vlgmr.msrb.gmra.mxu3 %v522_v38  ;;  %614 = vst [vmem:[#allocation1 + $0x3] ss:$4 sm:$0xff] %v1822_v16 }
 0x206   :  { %581 = vmatmul.f32.vlgmr.msra.gmra.mxu0 %v521_v51  ;;  %601 = vmatmul.f32.vlgmr.msra.gmra.mxu1 %v522_v38  ;;  %v1992_v51 = vld [vmem:[#allocation3 + $0x188] sm:$0xff]  ;;  %v1995_v38 = vld [vmem:[#allocation3 + $0x70] sm:$0xff] }
 0x207   :  { %742 = vmatpush.msrb.mxu2 %v1828_v58  ;;  %762 = vmatpush.msrb.mxu3 %v1831_v43 }
 0x208   :  { %782 = vmatpush.msra.mxu0 %v1363_v12  ;;  %802 = vmatpush.msra.mxu1 %v1367_v13  ;;  %v1852_v12 = vld [vmem:[#allocation3 + $0xc0] sm:$0xff] }
 0x209   :  { %743 = vmatpush.msrb.mxu2 %v1836_v47  ;;  %763 = vmatpush.msrb.mxu3 %v1839_v61  ;;  %v1855_v13 = vld [vmem:[#allocation3 + $0x1c0] sm:$0xff] }
 0x20a   :  { %783 = vmatpush.msra.mxu0 %v1374_v18  ;;  %803 = vmatpush.msra.mxu1 %v1376_v19  ;;  %v1860_v18 = vld [vmem:[#allocation3 + $0xb0] sm:$0xff] }
 0x20b   :  { %744 = vmatpush.msrb.mxu2 %v1844_v62  ;;  %764 = vmatpush.msrb.mxu3 %v1847_v63  ;;  %v1863_v19 = vld [vmem:[#allocation3 + $0x1b0] sm:$0xff] }
 0x20c   :  { %784 = vmatpush.msra.mxu0 %v1386_v22  ;;  %804 = vmatpush.msra.mxu1 %v1388_v23  ;;  %v2338_v22 = vld [vmem:[#allocation27_spill] sm:$0xff]  ;;  %v2339_v23 = vld [vmem:[#allocation28_spill] sm:$0xff] }
 0x20d   :  { %745 = vmatpush.msrb.mxu2 %v1852_v12  ;;  %765 = vmatpush.msrb.mxu3 %v1855_v13 }
 0x20e   :  { %785 = vmatpush.msra.mxu0 %v1398_v26  ;;  %805 = vmatpush.msra.mxu1 %v1400_v27  ;;  %v2342_v26 = vld [vmem:[#allocation29_spill] sm:$0xff]  ;;  %v2343_v27 = vld [vmem:[#allocation30_spill] sm:$0xff] }
 0x20f   :  { %746 = vmatpush.msrb.mxu2 %v1860_v18  ;;  %766 = vmatpush.msrb.mxu3 %v1863_v19 }
 0x210   :  { %786 = vmatpush.msra.mxu0 %v1410_v30  ;;  %806 = vmatpush.msra.mxu1 %v1412_v31 }
 0x211   :  { %747 = vmatpush.msrb.mxu2 %v1369_v14  ;;  %767 = vmatpush.msrb.mxu3 %v1371_v15  ;;  %v2334_v14 = vld [vmem:[#allocation25_spill] sm:$0xff]  ;;  %v2335_v15 = vld [vmem:[#allocation26_spill] sm:$0xff] }
 0x212   :  { %787 = vmatpush.msra.mxu0 %v1420_v34  ;;  %807 = vmatpush.msra.mxu1 %v1424_v35 }
 0x213   :  { %748 = vmatpush.msrb.mxu2 %v1380_v20  ;;  %768 = vmatpush.msrb.mxu3 %v1382_v21  ;;  %v2336_v20 = vld [vmem:[#allocation16_spill] sm:$0xff]  ;;  %v2337_v21 = vld [vmem:[#allocation17_spill] sm:$0xff] }
 0x214   :  { %788 = vmatpush.msra.mxu0 %v1438_v40  ;;  %808 = vmatpush.msra.mxu1 %v1440_v41  ;;  %v615_v41 = vld.sshfl [vmem:[#allocation1 + $0x8] sm:$0xff pattern:$0x73625140] }
 0x215   :  { %749 = vmatpush.msrb.mxu2 %v1392_v24  ;;  %769 = vmatpush.msrb.mxu3 %v1394_v25  ;;  %v2340_v24 = vld [vmem:[#allocation19_spill] sm:$0xff]  ;;  %v2341_v25 = vld [vmem:[#allocation20_spill] sm:$0xff] }
 0x216   :  { %789 = vmatpush.msra.mxu0 %v1451_v44  ;;  %809 = vmatpush.msra.mxu1 %v1453_v45  ;;  %v517_v44 = vld [vmem:[#allocation2 + $0x10] sm:$0xc0] }
 0x217   :  { %750 = vmatpush.msrb.mxu2 %v1404_v28  ;;  %770 = vmatpush.msrb.mxu3 %v1406_v29 }
 0x218   :  { %790 = vmatpush.msra.mxu0 %v1468_v49  ;;  %810 = vmatpush.msra.mxu1 %v1470_v50 }
 0x219   :  { %751 = vmatpush.msrb.mxu2 %v1416_v32  ;;  %771 = vmatpush.msrb.mxu3 %v1418_v33  ;;  %v518_v32 = vld [vmem:[#allocation2] sm:$0xc0] }
 0x21a   :  { %791 = vmatpush.msra.mxu0 %v1480_v53  ;;  %811 = vmatpush.msra.mxu1 %v1482_v54  ;;  %v620_v53 = vmul.f32 0.0, %v1822_v16  ;;  %v1956_v16 = vld [vmem:[#allocation3 + $0x1b8] sm:$0xff] }
 0x21b   :  { %752 = vmatpush.msrb.mxu2 %v1426_v36  ;;  %772 = vmatpush.msrb.mxu3 %v1428_v37 }
 0x21c   :  { %792 = vmatpush.msra.mxu0 %v1492_v57  ;;  %812 = vmatpush.msra.mxu1 %v2293_v42 }
 0x21d   :  { %753 = vmatpush.msrb.mxu2 %v2314_v0  ;;  %773 = vmatpush.msrb.mxu3 %v2315_v1  ;;  %v1921_v1 = vld [vmem:[#allocation3 + $0xf8] sm:$0xff] }
 0x21e   :  { %793 = vmatpush.msra.mxu0 %v2316_v2  ;;  %813 = vmatpush.msra.mxu1 %v2317_v3  ;;  %v1924_v2 = vld [vmem:[#allocation3 + $0x1f8] sm:$0xff]  ;;  %v1929_v3 = vld [vmem:[#allocation3 + $0xe8] sm:$0xff] }
 0x21f   :  { %754 = vmatpush.msrb.mxu2 %v2318_v4  ;;  %774 = vmatpush.msrb.mxu3 %v2319_v5  ;;  %v1932_v4 = vld [vmem:[#allocation3 + $0x1e8] sm:$0xff]  ;;  %v1937_v5 = vld [vmem:[#allocation3 + $0xd8] sm:$0xff] }
 0x220   :  { %794 = vmatpush.msra.mxu0 %v2320_v7  ;;  %814 = vmatpush.msra.mxu1 %v2321_v8  ;;  %v1940_v7 = vld [vmem:[#allocation3 + $0x1d8] sm:$0xff]  ;;  %v1945_v8 = vld [vmem:[#allocation3 + $0xc8] sm:$0xff] }
 0x221   :  { %755 = vmatpush.msrb.mxu2 %v2322_v9  ;;  %775 = vmatpush.msrb.mxu3 %v2323_v10  ;;  %v1948_v9 = vld [vmem:[#allocation3 + $0x1c8] sm:$0xff]  ;;  %v1953_v10 = vld [vmem:[#allocation3 + $0xb8] sm:$0xff] }
 0x222   :  { %795 = vmatpush.msra.mxu0 %v2334_v14  ;;  %815 = vmatpush.msra.mxu1 %v2335_v15  ;;  %v1998_v14 = vld [vmem:[#allocation3 + $0x170] sm:$0xff]  ;;  %v2001_v15 = vld [vmem:[#allocation3 + $0x78] sm:$0xff] }
 0x223   :  { %756 = vmatpush.msrb.mxu2 %v2336_v20  ;;  %776 = vmatpush.msrb.mxu3 %v2337_v21  ;;  %v2004_v20 = vld [vmem:[#allocation3 + $0x178] sm:$0xff]  ;;  %v2007_v21 = vld [vmem:[#allocation3 + $0x60] sm:$0xff] }
 0x224   :  { %796 = vmatpush.msra.mxu0 %v2338_v22  ;;  %816 = vmatpush.msra.mxu1 %v2339_v23  ;;  %v2010_v22 = vld [vmem:[#allocation3 + $0x160] sm:$0xff]  ;;  %v2013_v23 = vld [vmem:[#allocation3 + $0x68] sm:$0xff] }
 0x225   :  { %757 = vmatpush.msrb.mxu2 %v2340_v24  ;;  %777 = vmatpush.msrb.mxu3 %v2341_v25  ;;  %v2016_v24 = vld [vmem:[#allocation3 + $0x168] sm:$0xff]  ;;  %v2019_v25 = vld [vmem:[#allocation3 + $0x50] sm:$0xff] }
 0x226   :  { %797 = vmatpush.msra.mxu0 %v2342_v26  ;;  %817 = vmatpush.msra.mxu1 %v2343_v27  ;;  %v2022_v26 = vld [vmem:[#allocation3 + $0x150] sm:$0xff]  ;;  %v2025_v27 = vld [vmem:[#allocation3 + $0x58] sm:$0xff] }
 0x283   :  { %v582_v28 = vpop.f32.mrf.mxu0  ;;  %v602_v29 = vpop.f32.mrf.mxu1 }
 0x284   :  { %v603_v30 = vadd.f32 %v602_v29, %v582_v28  ;;  %v2028_v28 = vld [vmem:[#allocation3 + $0x158] sm:$0xff]  ;;  %v2031_v29 = vld [vmem:[#allocation3 + $0x40] sm:$0xff] }
 0x286   :  { %v608_v31 = vrot.slane %v603_v30, 2  ;;  %v2034_v30 = vld [vmem:[#allocation3 + $0x140] sm:$0xff] }
 0x287   :  { %2344 = vst [vmem:[#allocation9_spill] sm:$0xff] %v2034_v30 }
 0x288   :  { %v612_v33 = vadd.f32 %v608_v31, %v518_v32  ;;  %v542_v34 = vpop.f32.mrf.mxu2  ;;  %v562_v35 = vpop.f32.mrf.mxu3  ;;  %v2037_v31 = vld [vmem:[#allocation3 + $0x48] sm:$0xff] }
 0x289   :  { %v563_v36 = vadd.f32 %v562_v35, %v542_v34  ;;  %2345 = vst [vmem:[#allocation18_spill] sm:$0xff] %v2037_v31  ;;  %v2040_v32 = vld [vmem:[#allocation3 + $0x148] sm:$0xff]  ;;  %v2046_v34 = vld [vmem:[#allocation3 + $0x130] sm:$0xff]  ;;  %v2049_v35 = vld [vmem:[#allocation3 + $0x38] sm:$0xff] }
 0x28a   :  { %v619_v37 = vmax.f32 %v612_v33, 0.0  ;;  %2346 = vst [vmem:[#allocation10_spill] sm:$0xff] %v2040_v32  ;;  %v2043_v33 = vld [vmem:[#allocation3 + $0x30] sm:$0xff] }
 0x28b   :  { %v607_v40 = vrot.slane %v563_v36, 2  ;;  %2347 = vst [vmem:[#allocation11_spill] sm:$0xff] %v2043_v33  ;;  %v2052_v36 = vld [vmem:[#allocation3 + $0x138] sm:$0xff] }
 0x28c   :  { %624 = vst.sshfl [vmem:[#allocation1 + $0x8] sm:$0xff pattern:$0x73625140] %v619_v37  ;;  %v2055_v37 = vld [vmem:[#allocation3 + $0x20] sm:$0xff] }
 0x28d   :  { %v611_v45 = vadd.f32 %v607_v40, %v517_v44  ;;  %2348 = vst [vmem:[#allocation21_spill] sm:$0xff] %v2046_v34  ;;  %v2058_v40 = vld [vmem:[#allocation3 + $0x120] sm:$0xff]  ;;  %v2064_v44 = vld [vmem:[#allocation3 + $0x128] sm:$0xff] }
 0x28e   :  { %2349 = vst [vmem:[#allocation22_spill] sm:$0xff] %v2049_v35 }
 0x28f   :  { %v617_v49 = vadd.f32 %v615_v41, %v611_v45  ;;  %2350 = vst [vmem:[#allocation12_spill] sm:$0xff] %v2052_v36  ;;  %v2061_v41 = vld [vmem:[#allocation3 + $0x28] sm:$0xff]  ;;  %v2067_v45 = vld [vmem:[#allocation3 + $0x10] sm:$0xff] }
 0x290   :  { %2351 = vst [vmem:[#allocation13_spill] sm:$0xff] %v2055_v37 }
 0x291   :  { %v618_v50 = vmax.f32 %v617_v49, 0.0  ;;  %2352 = vst [vmem:[#allocation23_spill] sm:$0xff] %v2058_v40  ;;  %v2070_v49 = vld [vmem:[#allocation3 + $0x110] sm:$0xff] }
 0x292   :  { %2353 = vst [vmem:[#allocation24_spill] sm:$0xff] %v2061_v41 }
 0x293   :  { %623 = vst.sshfl [vmem:[#allocation1] sm:$0xff pattern:$0x73625140] %v618_v50  ;;  %v2073_v50 = vld [vmem:[#allocation3 + $0x18] sm:$0xff] }
 0x294   :  { %2354 = vst [vmem:[#allocation14_spill] sm:$0xff] %v2064_v44 }
 0x295   :  { %2355 = vst [vmem:[#allocation15_spill] sm:$0xff] %v2067_v45 }
 0x296   :  { %2356 = vst [vmem:[#allocation25_spill] sm:$0xff] %v2070_v49 }
 0x297   :  { %2357 = vst [vmem:[#allocation26_spill] sm:$0xff] %v2073_v50 }
 0x29a   :  { %v626_v54 = vld [vmem:[#allocation1 + $0x3] ss:$4 sm:$0xff] }
 0x29b   :  { %v1913_v57 = vadd.f32 %v626_v54, %v620_v53  ;;  %v2076_v53 = vld [vmem:[#allocation3 + $0x118] sm:$0xff]  ;;  %v2079_v54 = vld [vmem:[#allocation3] sm:$0xff] }
 0x29c   :  { %2358 = vst [vmem:[#allocation16_spill] sm:$0xff] %v2076_v53 }
 0x29d   :  { %633 = vst [vmem:[#allocation1] ss:$4 sm:$0xff] %v1913_v57 }
 0x29e   :  { %629 = vst.msk [vmem:[#allocation6 + $0x6] sm:$0x3] %vm289_vm3, %v1913_v57 }
 0x29f   :  { %2359 = vst [vmem:[#allocation17_spill] sm:$0xff] %v2079_v54 }
 0x2a4   :  { %v634_v42 = vld.sshfl [vmem:[#allocation1] sm:$0xff pattern:$0x73625140]  ;;  %v635_v0 = vld.sshfl [vmem:[#allocation1 + $0x8] sm:$0xff pattern:$0x73625140] }
 0x2a5   :  { %654 = vmatmul.f32.vlgmr.msra.gmra.mxu2 %v634_v42  ;;  %674 = vmatmul.f32.vlgmr.msra.gmra.mxu3 %v635_v0  ;;  %720 = vst [vmem:[#allocation1] ss:$4 sm:$0xff] %v1913_v57 }
 0x2a6   :  { %694 = vmatmul.f32.vlgmr.msrb.gmra.mxu0 %v634_v42  ;;  %714 = vmatmul.f32.vlgmr.msrb.gmra.mxu1 %v635_v0  ;;  %v2082_v42 = vld [vmem:[#allocation3 + $0x100] sm:$0xff]  ;;  %v2085_v0 = vld [vmem:[#allocation3 + $0x8] sm:$0xff] }
 0x2a7   :  { %855 = vmatpush.msra.mxu2 %v1828_v58  ;;  %875 = vmatpush.msra.mxu3 %v1831_v43  ;;  %2360 = vst [vmem:[#allocation27_spill] sm:$0xff] %v2082_v42 }
 0x2a8   :  { %895 = vmatpush.msrb.mxu0 %v1921_v1  ;;  %915 = vmatpush.msrb.mxu1 %v1924_v2  ;;  %2361 = vst [vmem:[#allocation28_spill] sm:$0xff] %v2085_v0 }
 0x2a9   :  { %856 = vmatpush.msra.mxu2 %v1836_v47  ;;  %876 = vmatpush.msra.mxu3 %v1839_v61 }
 0x2aa   :  { %896 = vmatpush.msrb.mxu0 %v1929_v3  ;;  %916 = vmatpush.msrb.mxu1 %v1932_v4 }
 0x2ab   :  { %857 = vmatpush.msra.mxu2 %v1844_v62  ;;  %877 = vmatpush.msra.mxu3 %v1847_v63 }
 0x2ac   :  { %897 = vmatpush.msrb.mxu0 %v1937_v5  ;;  %917 = vmatpush.msrb.mxu1 %v1940_v7 }
 0x2ad   :  { %858 = vmatpush.msra.mxu2 %v1852_v12  ;;  %878 = vmatpush.msra.mxu3 %v1855_v13 }
 0x2ae   :  { %898 = vmatpush.msrb.mxu0 %v1945_v8  ;;  %918 = vmatpush.msrb.mxu1 %v1948_v9 }
 0x2af   :  { %859 = vmatpush.msra.mxu2 %v1860_v18  ;;  %879 = vmatpush.msra.mxu3 %v1863_v19 }
 0x2b0   :  { %899 = vmatpush.msrb.mxu0 %v1953_v10  ;;  %919 = vmatpush.msrb.mxu1 %v1956_v16 }
 0x2b1   :  { %860 = vmatpush.msra.mxu2 %v1959_v39  ;;  %880 = vmatpush.msra.mxu3 %v1962_v56 }
 0x2b2   :  { %900 = vmatpush.msrb.mxu0 %v1965_v52  ;;  %920 = vmatpush.msrb.mxu1 %v1968_v46 }
 0x2b3   :  { %861 = vmatpush.msra.mxu2 %v1971_v55  ;;  %881 = vmatpush.msra.mxu3 %v1974_v11 }
 0x2b4   :  { %901 = vmatpush.msrb.mxu0 %v1977_v60  ;;  %921 = vmatpush.msrb.mxu1 %v1980_v48 }
 0x2b5   :  { %862 = vmatpush.msra.mxu2 %v1983_v59  ;;  %882 = vmatpush.msra.mxu3 %v1986_v6 }
 0x2b6   :  { %902 = vmatpush.msrb.mxu0 %v1989_v17  ;;  %922 = vmatpush.msrb.mxu1 %v1992_v51 }
 0x2b7   :  { %863 = vmatpush.msra.mxu2 %v1995_v38  ;;  %883 = vmatpush.msra.mxu3 %v1998_v14 }
 0x2b8   :  { %903 = vmatpush.msrb.mxu0 %v2001_v15  ;;  %923 = vmatpush.msrb.mxu1 %v2004_v20 }
 0x2b9   :  { %864 = vmatpush.msra.mxu2 %v2007_v21  ;;  %884 = vmatpush.msra.mxu3 %v2010_v22 }
 0x2ba   :  { %904 = vmatpush.msrb.mxu0 %v2013_v23  ;;  %924 = vmatpush.msrb.mxu1 %v2016_v24 }
 0x2bb   :  { %865 = vmatpush.msra.mxu2 %v2019_v25  ;;  %885 = vmatpush.msra.mxu3 %v2022_v26 }
 0x2bc   :  { %905 = vmatpush.msrb.mxu0 %v2025_v27  ;;  %925 = vmatpush.msrb.mxu1 %v2028_v28 }
 0x2bd   :  { %866 = vmatpush.msra.mxu2 %v2031_v29  ;;  %886 = vmatpush.msra.mxu3 %v2034_v30 }
 0x2be   :  { %906 = vmatpush.msrb.mxu0 %v2037_v31  ;;  %926 = vmatpush.msrb.mxu1 %v2040_v32 }
 0x2bf   :  { %867 = vmatpush.msra.mxu2 %v2043_v33  ;;  %887 = vmatpush.msra.mxu3 %v2046_v34 }
 0x2c0   :  { %907 = vmatpush.msrb.mxu0 %v2049_v35  ;;  %927 = vmatpush.msrb.mxu1 %v2052_v36  ;;  %v630_v36 = vld [vmem:[#allocation2 + $0x18] sm:$0x3] }
 0x2c1   :  { %868 = vmatpush.msra.mxu2 %v2055_v37  ;;  %888 = vmatpush.msra.mxu3 %v2058_v40 }
 0x2c2   :  { %908 = vmatpush.msrb.mxu0 %v2061_v41  ;;  %928 = vmatpush.msrb.mxu1 %v2064_v44 }
 0x2c3   :  { %869 = vmatpush.msra.mxu2 %v2067_v45  ;;  %889 = vmatpush.msra.mxu3 %v2070_v49  ;;  %v2088_v49 = vld [vmem:[#allocation3 + $0x108] sm:$0xff] }
 0x2c4   :  { %909 = vmatpush.msrb.mxu0 %v2073_v50  ;;  %929 = vmatpush.msrb.mxu1 %v2076_v53  ;;  %2362 = vst [vmem:[#allocation19_spill] sm:$0xff] %v2088_v49  ;;  %v631_v53 = vld [vmem:[#allocation2 + $0x8] sm:$0x3] }
 0x2c5   :  { %870 = vmatpush.msra.mxu2 %v2079_v54  ;;  %890 = vmatpush.msra.mxu3 %v2082_v42  ;;  %v721_v42 = vld.sshfl [vmem:[#allocation1 + $0x8] sm:$0xff pattern:$0x73625140] }
 0x2c6   :  { %910 = vmatpush.msrb.mxu0 %v2085_v0  ;;  %930 = vmatpush.msrb.mxu1 %v2088_v49  ;;  %v726_v0 = vmul.f32 0.0, %v1913_v57  ;;  %v2373_v57 = vld [vmem:[#allocation14_spill] sm:$0xff] }
 0x323   :  { %v695_v50 = vpop.f32.mrf.mxu0  ;;  %v715_v45 = vpop.f32.mrf.mxu1 }
 0x324   :  { %v716_v44 = vadd.f32 %v715_v45, %v695_v50 }
 0x326   :  { %v719_v41 = vadd.f32 %v716_v44, %v631_v53 }
 0x328   :  { %v655_v40 = vpop.f32.mrf.mxu2  ;;  %v675_v37 = vpop.f32.mrf.mxu3  ;;  %v725_v35 = vmax.f32 %v719_v41, 0.0 }
 0x329   :  { %v676_v54 = vadd.f32 %v675_v37, %v655_v40  ;;  %v1075_v40 = vld [vmem:[%s2198_s3] sm:$0xff] }
 0x32a   :  { %v729_v32 = vrot.slane %v725_v35, 6 }
 0x32b   :  { %v718_v34 = vadd.f32 %v676_v54, %v630_v36 }
 0x32d   :  { %v723_v33 = vadd.f32 %v721_v42, %v718_v34  ;;  %v1076_v34 = vld [vmem:[%s2198_s3 + $0x8] sm:$0xff] }
 0x32f   :  { %v724_v31 = vmax.f32 %v723_v33, 0.0 }
 0x331   :  { %v730_v30 = vsel %vm285_vm2, %v724_v31, %v729_v32 }
 0x332   :  { %v2093_v49 = vadd.f32 %v730_v30, %v726_v0  ;;  %v848_v30 = vld [vmem:[#allocation2 + $0x8] sm:$0x30] }
 0x334   :  { %733 = vst.msk [vmem:[#allocation6 + $0x8] sm:$0x3] %vm289_vm3, %v2093_v49 }
 0x335   :  { %737 = vst [vmem:[#allocation1] ss:$4 sm:$0xff] %v2093_v49 }
 0x33c   :  { %v738_v44 = vld.sshfl [vmem:[#allocation1] sm:$0xff pattern:$0x73625140]  ;;  %v739_v37 = vld.sshfl [vmem:[#allocation1 + $0x8] sm:$0xff pattern:$0x73625140] }
 0x33d   :  { %758 = vmatmul.f32.vlgmr.msrb.gmra.mxu2 %v738_v44  ;;  %778 = vmatmul.f32.vlgmr.msrb.gmra.mxu3 %v739_v37  ;;  %831 = vst [vmem:[#allocation1 + $0x1] ss:$4 sm:$0xff] %v2093_v49 }
 0x33e   :  { %798 = vmatmul.f32.vlgmr.msra.gmra.mxu0 %v738_v44  ;;  %818 = vmatmul.f32.vlgmr.msra.gmra.mxu1 %v739_v37 }
 0x33f   :  { %968 = vmatpush.msrb.mxu2 %v1828_v58  ;;  %988 = vmatpush.msrb.mxu3 %v1831_v43  ;;  %v2363_v58 = vld [vmem:[#allocation9_spill] sm:$0xff]  ;;  %v2364_v43 = vld [vmem:[#allocation18_spill] sm:$0xff] }
 0x340   :  { %1008 = vmatpush.msra.mxu0 %v1921_v1  ;;  %1028 = vmatpush.msra.mxu1 %v1924_v2  ;;  %v2374_v1 = vld [vmem:[#allocation15_spill] sm:$0xff]  ;;  %v2375_v2 = vld [vmem:[#allocation25_spill] sm:$0xff] }
 0x341   :  { %969 = vmatpush.msrb.mxu2 %v1836_v47  ;;  %989 = vmatpush.msrb.mxu3 %v1839_v61  ;;  %v2365_v47 = vld [vmem:[#allocation10_spill] sm:$0xff]  ;;  %v2366_v61 = vld [vmem:[#allocation11_spill] sm:$0xff] }
 0x342   :  { %1009 = vmatpush.msra.mxu0 %v1929_v3  ;;  %1029 = vmatpush.msra.mxu1 %v1932_v4  ;;  %v2376_v3 = vld [vmem:[#allocation26_spill] sm:$0xff]  ;;  %v2377_v4 = vld [vmem:[#allocation16_spill] sm:$0xff] }
 0x343   :  { %970 = vmatpush.msrb.mxu2 %v1844_v62  ;;  %990 = vmatpush.msrb.mxu3 %v1847_v63  ;;  %v2367_v62 = vld [vmem:[#allocation21_spill] sm:$0xff]  ;;  %v2368_v63 = vld [vmem:[#allocation22_spill] sm:$0xff] }
 0x344   :  { %1010 = vmatpush.msra.mxu0 %v1937_v5  ;;  %1030 = vmatpush.msra.mxu1 %v1940_v7  ;;  %v2378_v5 = vld [vmem:[#allocation17_spill] sm:$0xff]  ;;  %v2379_v7 = vld [vmem:[#allocation27_spill] sm:$0xff] }
 0x345   :  { %971 = vmatpush.msrb.mxu2 %v1852_v12  ;;  %991 = vmatpush.msrb.mxu3 %v1855_v13  ;;  %v2369_v12 = vld [vmem:[#allocation12_spill] sm:$0xff]  ;;  %v2370_v13 = vld [vmem:[#allocation13_spill] sm:$0xff] }
 0x346   :  { %1011 = vmatpush.msra.mxu0 %v1945_v8  ;;  %1031 = vmatpush.msra.mxu1 %v1948_v9  ;;  %v2380_v8 = vld [vmem:[#allocation28_spill] sm:$0xff]  ;;  %v2381_v9 = vld [vmem:[#allocation19_spill] sm:$0xff] }
 0x347   :  { %972 = vmatpush.msrb.mxu2 %v1860_v18  ;;  %992 = vmatpush.msrb.mxu3 %v1863_v19  ;;  %v2371_v18 = vld [vmem:[#allocation23_spill] sm:$0xff]  ;;  %v2372_v19 = vld [vmem:[#allocation24_spill] sm:$0xff] }
 0x348   :  { %1012 = vmatpush.msra.mxu0 %v1953_v10  ;;  %1032 = vmatpush.msra.mxu1 %v1956_v16 }
 0x349   :  { %973 = vmatpush.msrb.mxu2 %v1959_v39  ;;  %993 = vmatpush.msrb.mxu3 %v1962_v56 }
 0x34a   :  { %1013 = vmatpush.msra.mxu0 %v1965_v52  ;;  %1033 = vmatpush.msra.mxu1 %v1968_v46  ;;  %v735_v52 = vld [vmem:[#allocation2 + $0x8] sm:$0xc] }
 0x34b   :  { %974 = vmatpush.msrb.mxu2 %v1971_v55  ;;  %994 = vmatpush.msrb.mxu3 %v1974_v11 }
 0x34c   :  { %1014 = vmatpush.msra.mxu0 %v1977_v60  ;;  %1034 = vmatpush.msra.mxu1 %v1980_v48 }
 0x34d   :  { %975 = vmatpush.msrb.mxu2 %v1983_v59  ;;  %995 = vmatpush.msrb.mxu3 %v1986_v6  ;;  %v832_v6 = vld.sshfl [vmem:[#allocation1 + $0x8] sm:$0xff pattern:$0x73625140] }
 0x34e   :  { %1015 = vmatpush.msra.mxu0 %v1989_v17  ;;  %1035 = vmatpush.msra.mxu1 %v1992_v51  ;;  %v734_v17 = vld [vmem:[#allocation2 + $0x18] sm:$0xc] }
 0x34f   :  { %976 = vmatpush.msrb.mxu2 %v1995_v38  ;;  %996 = vmatpush.msrb.mxu3 %v1998_v14 }
 0x350   :  { %1016 = vmatpush.msra.mxu0 %v2001_v15  ;;  %1036 = vmatpush.msra.mxu1 %v2004_v20  ;;  %v837_v15 = vmul.f32 0.0, %v2093_v49  ;;  %v847_v49 = vld [vmem:[#allocation2 + $0x18] sm:$0x30] }
 0x351   :  { %977 = vmatpush.msrb.mxu2 %v2007_v21  ;;  %997 = vmatpush.msrb.mxu3 %v2010_v22 }
 0x352   :  { %1017 = vmatpush.msra.mxu0 %v2013_v23  ;;  %1037 = vmatpush.msra.mxu1 %v2016_v24 }
 0x353   :  { %978 = vmatpush.msrb.mxu2 %v2019_v25  ;;  %998 = vmatpush.msrb.mxu3 %v2022_v26 }
 0x354   :  { %1018 = vmatpush.msra.mxu0 %v2025_v27  ;;  %1038 = vmatpush.msra.mxu1 %v2028_v28  ;;  %v1078_v28 = vld [vmem:[%s2198_s3 + $0x18] sm:$0xff] }
 0x355   :  { %979 = vmatpush.msrb.mxu2 %v2031_v29  ;;  %999 = vmatpush.msrb.mxu3 %v2363_v58  ;;  %v1077_v29 = vld [vmem:[%s2198_s3 + $0x10] sm:$0xff] }
 0x356   :  { %1019 = vmatpush.msra.mxu0 %v2364_v43  ;;  %1039 = vmatpush.msra.mxu1 %v2365_v47  ;;  %v1073_v43 = vld [vmem:[#allocation6] sm:$0xff] }
 0x357   :  { %980 = vmatpush.msrb.mxu2 %v2366_v61  ;;  %1000 = vmatpush.msrb.mxu3 %v2367_v62 }
 0x358   :  { %1020 = vmatpush.msra.mxu0 %v2368_v63  ;;  %1040 = vmatpush.msra.mxu1 %v2369_v12  ;;  %v961_v12 = vld [vmem:[#allocation2 + $0x8] sm:$0xc0] }
 0x359   :  { %981 = vmatpush.msrb.mxu2 %v2370_v13  ;;  %1001 = vmatpush.msrb.mxu3 %v2371_v18 }
 0x35a   :  { %1021 = vmatpush.msra.mxu0 %v2372_v19  ;;  %1041 = vmatpush.msra.mxu1 %v2373_v57 }
 0x35b   :  { %982 = vmatpush.msrb.mxu2 %v2374_v1  ;;  %1002 = vmatpush.msrb.mxu3 %v2375_v2 }
 0x35c   :  { %1022 = vmatpush.msra.mxu0 %v2376_v3  ;;  %1042 = vmatpush.msra.mxu1 %v2377_v4  ;;  %v960_v4 = vld [vmem:[#allocation2 + $0x18] sm:$0xc0] }
 0x35d   :  { %983 = vmatpush.msrb.mxu2 %v2378_v5  ;;  %1003 = vmatpush.msrb.mxu3 %v2379_v7  ;;  %v1156_v7 = vld [vmem:[%s2200_s5] ss:$0 sm:$0xff]  ;;  %s1121_s5 = sshll.u32 %s1276_s28, 4  ;;  %s1122_s5 = int_to_ptr.vmem [resolvable:$true] %s1121_s5 }
 0x35e   :  { %1023 = vmatpush.msra.mxu0 %v2380_v8  ;;  %1043 = vmatpush.msra.mxu1 %v2381_v9 }
 0x3bb   :  { %v799_v10 = vpop.f32.mrf.mxu0  ;;  %v819_v16 = vpop.f32.mrf.mxu1 }
 0x3bc   :  { %v820_v39 = vadd.f32 %v819_v16, %v799_v10 }
 0x3be   :  { %v825_v56 = vrot.slane %v820_v39, 6 }
 0x3c0   :  { %v829_v46 = vadd.f32 %v825_v56, %v735_v52  ;;  %v759_v55 = vpop.f32.mrf.mxu2  ;;  %v779_v11 = vpop.f32.mrf.mxu3 }
 0x3c1   :  { %v780_v60 = vadd.f32 %v779_v11, %v759_v55 }
 0x3c2   :  { %v836_v48 = vmax.f32 %v829_v46, 0.0 }
 0x3c3   :  { %v824_v59 = vrot.slane %v780_v60, 6 }
 0x3c4   :  { %841 = vst.sshfl [vmem:[#allocation1 + $0x8] sm:$0xff pattern:$0x73625140] %v836_v48 }
 0x3c5   :  { %v828_v51 = vadd.f32 %v824_v59, %v734_v17 }
 0x3c7   :  { %v834_v38 = vadd.f32 %v832_v6, %v828_v51 }
 0x3c9   :  { %v835_v14 = vmax.f32 %v834_v38, 0.0 }
 0x3cb   :  { %840 = vst.sshfl [vmem:[#allocation1] sm:$0xff pattern:$0x73625140] %v835_v14 }
 0x3d2   :  { %v843_v20 = vld [vmem:[#allocation1 + $0x1] ss:$4 sm:$0xff] }
 0x3d3   :  { %v845_v21 = vadd.f32 %v843_v20, %v837_v15 }
 0x3d5   :  { %850 = vst [vmem:[#allocation1] ss:$4 sm:$0xff] %v845_v21  ;;  %v950_v42 = vmul.f32 0.0, %v845_v21 }
 0x3d6   :  { %846 = vst.msk [vmem:[#allocation6 + $0xa] sm:$0x3] %vm289_vm3, %v845_v21 }
 0x3dc   :  { %v851_v22 = vld.sshfl [vmem:[#allocation1] sm:$0xff pattern:$0x73625140]  ;;  %v852_v23 = vld.sshfl [vmem:[#allocation1 + $0x8] sm:$0xff pattern:$0x73625140] }
 0x3dd   :  { %871 = vmatmul.f32.vlgmr.msra.gmra.mxu2 %v851_v22  ;;  %891 = vmatmul.f32.vlgmr.msra.gmra.mxu3 %v852_v23  ;;  %944 = vst [vmem:[#allocation1 + $0x2] ss:$4 sm:$0xff] %v845_v21 }
 0x3de   :  { %911 = vmatmul.f32.vlgmr.msrb.gmra.mxu0 %v851_v22  ;;  %931 = vmatmul.f32.vlgmr.msrb.gmra.mxu1 %v852_v23 }
 0x3df   :  { %1102 = vmatpush.msra.mxu2 %v1078_v28  ;;  %1146 = vmatpush.msra.mxu3 %v1078_v28 }
 0x3e1   :  { %1103 = vmatpush.msra.mxu2 %v1077_v29  ;;  %1147 = vmatpush.msra.mxu3 %v1077_v29 }
 0x3e3   :  { %1104 = vmatpush.msra.mxu2 %v1076_v34  ;;  %1148 = vmatpush.msra.mxu3 %v1076_v34 }
 0x3e4   :  { %v945_v45 = vld.sshfl [vmem:[#allocation1 + $0x8] sm:$0xff pattern:$0x73625140] }
 0x3e5   :  { %1105 = vmatpush.msra.mxu2 %v1075_v40  ;;  %1149 = vmatpush.msra.mxu3 %v1075_v40 }
 0x45b   :  { %v912_v24 = vpop.f32.mrf.mxu0  ;;  %v932_v25 = vpop.f32.mrf.mxu1 }
 0x45c   :  { %v933_v26 = vadd.f32 %v932_v25, %v912_v24 }
 0x45e   :  { %v938_v27 = vrot.slane %v933_v26, 4 }
 0x460   :  { %v942_v31 = vadd.f32 %v938_v27, %v848_v30  ;;  %v872_v32 = vpop.f32.mrf.mxu2  ;;  %v892_v33 = vpop.f32.mrf.mxu3 }
 0x461   :  { %v893_v35 = vadd.f32 %v892_v33, %v872_v32 }
 0x462   :  { %v949_v36 = vmax.f32 %v942_v31, 0.0 }
 0x463   :  { %v937_v41 = vrot.slane %v893_v35, 4 }
 0x464   :  { %954 = vst.sshfl [vmem:[#allocation1 + $0x8] sm:$0xff pattern:$0x73625140] %v949_v36 }
 0x465   :  { %v941_v50 = vadd.f32 %v937_v41, %v847_v49 }
 0x467   :  { %v947_v53 = vadd.f32 %v945_v45, %v941_v50 }
 0x469   :  { %v948_v54 = vmax.f32 %v947_v53, 0.0 }
 0x46b   :  { %953 = vst.sshfl [vmem:[#allocation1] sm:$0xff pattern:$0x73625140] %v948_v54 }
 0x472   :  { %v956_v0 = vld [vmem:[#allocation1 + $0x2] ss:$4 sm:$0xff] }
 0x473   :  { %v958_v44 = vadd.f32 %v956_v0, %v950_v42 }
 0x475   :  { %963 = vst [vmem:[#allocation1] ss:$4 sm:$0xff] %v958_v44  ;;  %v1063_v39 = vmul.f32 0.0, %v958_v44 }
 0x476   :  { %959 = vst.msk [vmem:[#allocation6 + $0xc] sm:$0x3] %vm289_vm3, %v958_v44 }
 0x47c   :  { %v964_v37 = vld.sshfl [vmem:[#allocation1] sm:$0xff pattern:$0x73625140]  ;;  %v965_v58 = vld.sshfl [vmem:[#allocation1 + $0x8] sm:$0xff pattern:$0x73625140] }
 0x47d   :  { %984 = vmatmul.f32.vlgmr.msrb.gmra.mxu2 %v964_v37  ;;  %1004 = vmatmul.f32.vlgmr.msrb.gmra.mxu3 %v965_v58  ;;  %1057 = vst [vmem:[#allocation1 + $0x3] ss:$4 sm:$0xff] %v958_v44 }
 0x47e   :  { %1024 = vmatmul.f32.vlgmr.msra.gmra.mxu0 %v964_v37  ;;  %1044 = vmatmul.f32.vlgmr.msra.gmra.mxu1 %v965_v58 }
 0x484   :  { %v1058_v3 = vld.sshfl [vmem:[#allocation1 + $0x8] sm:$0xff pattern:$0x73625140] }
 0x485   :  { %1144 = vmatmul.msk.f32.vlgmr.msra.gmra.mxu2 %vm1083_vm4, %v1073_v43 }
 0x4fb   :  { %v1025_v47 = vpop.f32.mrf.mxu0  ;;  %v1045_v61 = vpop.f32.mrf.mxu1 }
 0x4fc   :  { %v1046_v62 = vadd.f32 %v1045_v61, %v1025_v47 }
 0x4fe   :  { %v1051_v63 = vrot.slane %v1046_v62, 2 }
 0x500   :  { %v1055_v13 = vadd.f32 %v1051_v63, %v961_v12  ;;  %v985_v18 = vpop.f32.mrf.mxu2  ;;  %v1005_v19 = vpop.f32.mrf.mxu3 }
 0x501   :  { %v1006_v57 = vadd.f32 %v1005_v19, %v985_v18 }
 0x502   :  { %v1062_v1 = vmax.f32 %v1055_v13, 0.0 }
 0x503   :  { %v1050_v2 = vrot.slane %v1006_v57, 2 }
 0x504   :  { %1067 = vst.sshfl [vmem:[#allocation1 + $0x8] sm:$0xff pattern:$0x73625140] %v1062_v1 }
 0x505   :  { %v1054_v5 = vadd.f32 %v1050_v2, %v960_v4 }
 0x507   :  { %v1060_v8 = vadd.f32 %v1058_v3, %v1054_v5 }
 0x508   :  { %v1107_v9 = vpop.f32.mrf.mxu2 }
 0x509   :  { %v1061_v10 = vmax.f32 %v1060_v8, 0.0  ;;  %v1108_v16 = vadd.f32 %v1156_v7, %v1107_v9 }
 0x50b   :  { %1066 = vst.sshfl [vmem:[#allocation1] sm:$0xff pattern:$0x73625140] %v1061_v10 }
 0x50c   :  { %1113 = vst.msk [vmem:[%s2202_s7] sm:$0xff] %vm122_vm1, %v1108_v16 }
 0x512   :  { %v1069_v56 = vld [vmem:[#allocation1 + $0x3] ss:$4 sm:$0xff] }
 0x513   :  { %v1071_v52 = vadd.f32 %v1069_v56, %v1063_v39 }
 0x515   :  { %1072 = vst.msk [vmem:[#allocation6 + $0xe] sm:$0x3] %vm289_vm3, %v1071_v52 }
 0x516   :  { %1129 = dma.vmem_to_hbm [thread:$0]  %s1122_s5, 256, %s1124_s9, [#allocation5], %s1277_s10, %s1277_s10, %s1278_s11  }
 0x51c   :  { %v1074_v46 = vld [vmem:[#allocation6 + $0x8] sm:$0xff] }
 0x51d   :  { %1145 = vmatmul.msk.f32.vlgmr.msra.gmra.mxu3 %vm1083_vm4, %v1074_v46 }
 0x5a0   :  { %v1110_v55 = vpop.f32.mrf.mxu3 }
 0x5a1   :  { %v1111_v11 = vadd.f32 %v1156_v7, %v1110_v55 }
 0x5a3   :  { %1114 = vst.msk [vmem:[%s2202_s7 + $0x8] sm:$0xff] %vm122_vm1, %v1111_v11 }
 0x5a4   :  { %1271 = dma.done.wait [#allocation5], 256  }
 0x5a5   :  { %1272 = vsyncadd [#allocation5], 4294967040 }
 0x5a6   :  { %1136 = vsyncpa [#allocation4], 1 }
 0x5a7   :  { %1137 = vsyncpa [#allocation5], 1 }

</bundles_post_ra>
